<compile_context>
chip_gen: v5e
topology: v5e:2x2
jax: 0.10.0
libtpu: 0.0.40
codegen_flags: <defaults>
</compile_context>

<pallas_src>
import functools

import jax
import jax.numpy as jnp
from jax.experimental import pallas as pl
from jax.experimental.pallas import tpu as pltpu


def _conv_inorm_kernel(x_ref, w_ref, mask_ref, o_ref, *, k, wp, inv_count):
    """Fused Conv2d(k,k) + InstanceNorm2d for one batch element, lane-dense.

    x_ref:    (1, C_in, L)        upsampled + reflection-padded input, spatial flattened
    w_ref:    (k*k, C_out, C_in)  per-tap weight matrices
    mask_ref: (1, M)              1.0 where the flat position is a real output pixel
    o_ref:    (1, C_out, M)       M = Ho1 * Wp (stride-1 output on the padded-width grid)
    """
    c_out, m = o_ref.shape[1], o_ref.shape[2]
    x = x_ref[0]                                       # (C_in, L)

    # Convolution as k*k shifted matmuls: out[:, q] += W_tap @ x[:, q + ki*Wp + kj].
    acc = jnp.zeros((c_out, m), jnp.float32)
    for ki in range(k):
        for kj in range(k):
            off = ki * wp + kj
            acc = acc + jnp.dot(
                w_ref[ki * k + kj], x[:, off:off + m],
                preferred_element_type=jnp.float32)
    # NOTE: the Conv2d bias is dropped on purpose: InstanceNorm2d(affine=False)
    # subtracts the per-channel mean right after, so the bias cancels exactly.

    # InstanceNorm2d(affine=False), eps=1e-5 — single pass over acc:
    # per-channel sum / sum-of-squares over the *valid* (unmasked) positions.
    mask = mask_ref[...]                               # (1, m)
    ym = acc * mask
    s1 = jnp.sum(ym, axis=1, keepdims=True)            # (c_out, 1)
    s2 = jnp.sum(ym * ym, axis=1, keepdims=True)       # (c_out, 1)
    mean = s1 * inv_count
    var = s2 * inv_count - mean * mean
    o_ref[0] = ((acc - mean) * jax.lax.rsqrt(var + 1e-5)).astype(o_ref.dtype)


@functools.partial(jax.jit, static_argnames=("kernel_size", "stride", "upsample"))
def upsample_conv_layer(x, skip_input, weight, bias, *, kernel_size, stride, upsample):
    """x, skip_input: NCHW (PyTorch convention). weight: (C_out, C_in, K, K).

    `bias` is accepted for API parity with nn.Conv2d but is mathematically a
    no-op here (cancelled by InstanceNorm2d's mean subtraction), so it is not
    fed to the kernel.
    """
    del bias
    k = kernel_size
    # --- glue: nearest upsample + reflection padding (cheap, XLA) ---
    # TODO(synk): fuse the nearest-upsample into the kernel to cut activation
    # HBM traffic by another upsample**2 (needs in-kernel repeat/relayout).
    if upsample:
        x = jnp.repeat(jnp.repeat(x, upsample, axis=2), upsample, axis=3)
    pad = k // 2
    x = jnp.pad(x, ((0, 0), (0, 0), (pad, pad), (pad, pad)), mode="reflect")

    n, c_in, hp, wp = x.shape
    c_out = weight.shape[0]
    ho1, wo1 = hp - k + 1, wp - k + 1                  # stride-1 conv output extents
    ho = (hp - k) // stride + 1                        # true (strided) output extents
    wo = (wp - k) // stride + 1
    m = ho1 * wp                                       # flat padded-width output grid

    # Flatten spatial; pad the tail so every tap slice [off, off+m) is in-bounds.
    l_pad = m + (k - 1) * wp + (k - 1)
    x_flat = x.reshape(n, c_in, hp * wp)
    if l_pad > hp * wp:
        x_flat = jnp.pad(x_flat, ((0, 0), (0, 0), (0, l_pad - hp * wp)))

    # Per-tap weight matrices: (C_out, C_in, K, K) -> (K*K, C_out, C_in).
    w_taps = jnp.transpose(weight, (2, 3, 0, 1)).reshape(k * k, c_out, c_in)

    # Validity mask over the flat padded-width grid (drops the wrap-around
    # columns and, for stride > 1, the skipped rows/cols).
    cols = jnp.arange(wp)
    rows = jnp.arange(ho1)
    valid = ((cols[None, :] < wo1) & (cols[None, :] % stride == 0)
             & (rows[:, None] % stride == 0))
    mask = valid.reshape(1, m).astype(x.dtype)

    kernel = functools.partial(
        _conv_inorm_kernel, k=k, wp=wp, inv_count=1.0 / float(ho * wo))

    # TODO(synk): for large images, tile the flat spatial axis with a second grid
    # dimension and switch the instance-norm stats to a two-phase sum/sumsq
    # accumulation so each block stays within the v7x 64 MiB VMEM budget.
    out_flat = pl.pallas_call(
        kernel,
        out_shape=jax.ShapeDtypeStruct((n, c_out, m), x.dtype),
        grid_spec=pltpu.PrefetchScalarGridSpec(
            num_scalar_prefetch=0,
            grid=(n,),
            in_specs=[
                pl.BlockSpec((1, c_in, l_pad), lambda i: (i, 0, 0)),
                pl.BlockSpec((k * k, c_out, c_in), lambda i: (0, 0, 0)),
                pl.BlockSpec((1, m), lambda i: (0, 0)),
            ],
            out_specs=pl.BlockSpec((1, c_out, m), lambda i: (i, 0, 0)),
        ),
        compiler_params=pltpu.CompilerParams(
            dimension_semantics=("parallel",),
        ),
    )(x_flat, w_taps, mask)

    # (N, C_out, Ho1*Wp) is flattened NCHW on the padded-width grid: reshape,
    # drop the wrap-around columns, apply the conv stride — no transpose needed.
    out = out_flat.reshape(n, c_out, ho1, wp)[:, :, ::stride, :wo1:stride]
    # --- glue: concat with skip along channels ---
    return jnp.concatenate((out, skip_input), axis=1)


def _reference(x, skip_input, weight, bias, *, kernel_size, stride, upsample):
    """Pure-JAX reference mirroring the PyTorch module (includes the bias)."""
    if upsample:
        x = jnp.repeat(jnp.repeat(x, upsample, axis=2), upsample, axis=3)
    pad = kernel_size // 2
    x = jnp.pad(x, ((0, 0), (0, 0), (pad, pad), (pad, pad)), mode="reflect")
    out = jax.lax.conv_general_dilated(
        x, weight, window_strides=(stride, stride), padding="VALID",
        dimension_numbers=("NCHW", "OIHW", "NCHW"),
    ) + bias[None, :, None, None]
    mean = jnp.mean(out, axis=(2, 3), keepdims=True)
    var = jnp.mean((out - mean) ** 2, axis=(2, 3), keepdims=True)
    out = (out - mean) * jax.lax.rsqrt(var + 1e-5)
    return jnp.concatenate((out, skip_input), axis=1)


if __name__ == "__main__":
    key = jax.random.PRNGKey(0)
    k_x, k_skip, k_w, k_b = jax.random.split(key, 4)

    # Module config: in_channels=4, out_channels=4, kernel_size=3, stride=1, upsample=2
    N, C_in, H, W = 2, 4, 16, 16
    C_out, K, STRIDE, UPSAMPLE = 4, 3, 1, 2

    x = jax.random.normal(k_x, (N, C_in, H, W), dtype=jnp.float32)
    skip = jax.random.normal(
        k_skip, (N, C_out, H * UPSAMPLE, W * UPSAMPLE), dtype=jnp.float32
    )
    # Deterministic synthetic Conv2d parameters (PyTorch shapes).
    weight = jax.random.normal(k_w, (C_out, C_in, K, K), dtype=jnp.float32) * 0.1
    bias = jax.random.normal(k_b, (C_out,), dtype=jnp.float32) * 0.1

    out = upsample_conv_layer(
        x, skip, weight, bias, kernel_size=K, stride=STRIDE, upsample=UPSAMPLE
    )
    out = jax.block_until_ready(out)

    ref = _reference(
        x, skip, weight, bias, kernel_size=K, stride=STRIDE, upsample=UPSAMPLE
    )
    assert out.shape == (N, 2 * C_out, H * UPSAMPLE, W * UPSAMPLE), out.shape
    assert jnp.allclose(out, ref, atol=1e-4, rtol=1e-4), float(
        jnp.max(jnp.abs(out - ref))
    )

    print("KERNEL_OK")
</pallas_src>

<mosaic_0001>
module attributes {stable_mosaic.version = 11 : i64} {
  func.func @_conv_inorm_kernel(%arg0: i32, %arg1: memref<1x4x1158xf32, #tpu.memory_space<vmem>>, %arg2: memref<9x4x4xf32, #tpu.memory_space<vmem>>, %arg3: memref<1x1088xf32, #tpu.memory_space<vmem>>, %arg4: memref<1x4x1088xf32, #tpu.memory_space<vmem>>) attributes {dimension_semantics = [#tpu.dimension_semantics<parallel>], iteration_bounds = array<i64: 2>, scalar_prefetch = 0 : i64, scratch_operands = 0 : i64, tpu.core_type = #tpu.core_type<tc>, window_params = [{transform_indices = @transform_0, window_bounds = array<i64: 1, 4, 1158>}, {pipeline_mode = #tpu.pipeline_mode<synchronous>, transform_indices = @transform_1, window_bounds = array<i64: 9, 4, 4>}, {pipeline_mode = #tpu.pipeline_mode<synchronous>, transform_indices = @transform_2, window_bounds = array<i64: 1, 1088>}, {transform_indices = @transform_3, window_bounds = array<i64: 1, 4, 1088>}]} {
    %c0 = arith.constant 0 : index
    %c0_0 = arith.constant 0 : index
    %c0_1 = arith.constant 0 : index
    %0 = vector.load %arg1[%c0, %c0_0, %c0_1] : memref<1x4x1158xf32, #tpu.memory_space<vmem>>, vector<1x4x1158xf32>
    %1 = vector.shape_cast %0 : vector<1x4x1158xf32> to vector<4x1158xf32>
    %cst = arith.constant 0.000000e+00 : f32
    %2 = vector.broadcast %cst : f32 to vector<4x1088xf32>
    %c0_2 = arith.constant 0 : index
    %c0_3 = arith.constant 0 : index
    %c0_4 = arith.constant 0 : index
    %3 = vector.load %arg2[%c0_2, %c0_3, %c0_4] : memref<9x4x4xf32, #tpu.memory_space<vmem>>, vector<1x4x4xf32>
    %4 = vector.shape_cast %3 : vector<1x4x4xf32> to vector<4x4xf32>
    %5 = vector.extract_strided_slice %1 {offsets = [0, 0], sizes = [4, 1088], strides = [1, 1]} : vector<4x1158xf32> to vector<4x1088xf32>
    %cst_5 = arith.constant dense<0.000000e+00> : vector<4x1088xf32>
    %6 = tpu.matmul %4, %5, %cst_5 {dimension_numbers = #tpu.dot_dimension_numbers<[1], [0], [0], [1], [0, 0, 1, 1], [], []>} : vector<4x4xf32>, vector<4x1088xf32>, vector<4x1088xf32> -> vector<4x1088xf32>
    %7 = arith.addf %2, %6 : vector<4x1088xf32>
    %c1 = arith.constant 1 : index
    %c0_6 = arith.constant 0 : index
    %c0_7 = arith.constant 0 : index
    %8 = vector.load %arg2[%c1, %c0_6, %c0_7] : memref<9x4x4xf32, #tpu.memory_space<vmem>>, vector<1x4x4xf32>
    %9 = vector.shape_cast %8 : vector<1x4x4xf32> to vector<4x4xf32>
    %10 = vector.extract_strided_slice %1 {offsets = [0, 1], sizes = [4, 1088], strides = [1, 1]} : vector<4x1158xf32> to vector<4x1088xf32>
    %cst_8 = arith.constant dense<0.000000e+00> : vector<4x1088xf32>
    %11 = tpu.matmul %9, %10, %cst_8 {dimension_numbers = #tpu.dot_dimension_numbers<[1], [0], [0], [1], [0, 0, 1, 1], [], []>} : vector<4x4xf32>, vector<4x1088xf32>, vector<4x1088xf32> -> vector<4x1088xf32>
    %12 = arith.addf %7, %11 : vector<4x1088xf32>
    %c2 = arith.constant 2 : index
    %c0_9 = arith.constant 0 : index
    %c0_10 = arith.constant 0 : index
    %13 = vector.load %arg2[%c2, %c0_9, %c0_10] : memref<9x4x4xf32, #tpu.memory_space<vmem>>, vector<1x4x4xf32>
    %14 = vector.shape_cast %13 : vector<1x4x4xf32> to vector<4x4xf32>
    %15 = vector.extract_strided_slice %1 {offsets = [0, 2], sizes = [4, 1088], strides = [1, 1]} : vector<4x1158xf32> to vector<4x1088xf32>
    %cst_11 = arith.constant dense<0.000000e+00> : vector<4x1088xf32>
    %16 = tpu.matmul %14, %15, %cst_11 {dimension_numbers = #tpu.dot_dimension_numbers<[1], [0], [0], [1], [0, 0, 1, 1], [], []>} : vector<4x4xf32>, vector<4x1088xf32>, vector<4x1088xf32> -> vector<4x1088xf32>
    %17 = arith.addf %12, %16 : vector<4x1088xf32>
    %c3 = arith.constant 3 : index
    %c0_12 = arith.constant 0 : index
    %c0_13 = arith.constant 0 : index
    %18 = vector.load %arg2[%c3, %c0_12, %c0_13] : memref<9x4x4xf32, #tpu.memory_space<vmem>>, vector<1x4x4xf32>
    %19 = vector.shape_cast %18 : vector<1x4x4xf32> to vector<4x4xf32>
    %20 = vector.extract_strided_slice %1 {offsets = [0, 34], sizes = [4, 1088], strides = [1, 1]} : vector<4x1158xf32> to vector<4x1088xf32>
    %cst_14 = arith.constant dense<0.000000e+00> : vector<4x1088xf32>
    %21 = tpu.matmul %19, %20, %cst_14 {dimension_numbers = #tpu.dot_dimension_numbers<[1], [0], [0], [1], [0, 0, 1, 1], [], []>} : vector<4x4xf32>, vector<4x1088xf32>, vector<4x1088xf32> -> vector<4x1088xf32>
    %22 = arith.addf %17, %21 : vector<4x1088xf32>
    %c4 = arith.constant 4 : index
    %c0_15 = arith.constant 0 : index
    %c0_16 = arith.constant 0 : index
    %23 = vector.load %arg2[%c4, %c0_15, %c0_16] : memref<9x4x4xf32, #tpu.memory_space<vmem>>, vector<1x4x4xf32>
    %24 = vector.shape_cast %23 : vector<1x4x4xf32> to vector<4x4xf32>
    %25 = vector.extract_strided_slice %1 {offsets = [0, 35], sizes = [4, 1088], strides = [1, 1]} : vector<4x1158xf32> to vector<4x1088xf32>
    %cst_17 = arith.constant dense<0.000000e+00> : vector<4x1088xf32>
    %26 = tpu.matmul %24, %25, %cst_17 {dimension_numbers = #tpu.dot_dimension_numbers<[1], [0], [0], [1], [0, 0, 1, 1], [], []>} : vector<4x4xf32>, vector<4x1088xf32>, vector<4x1088xf32> -> vector<4x1088xf32>
    %27 = arith.addf %22, %26 : vector<4x1088xf32>
    %c5 = arith.constant 5 : index
    %c0_18 = arith.constant 0 : index
    %c0_19 = arith.constant 0 : index
    %28 = vector.load %arg2[%c5, %c0_18, %c0_19] : memref<9x4x4xf32, #tpu.memory_space<vmem>>, vector<1x4x4xf32>
    %29 = vector.shape_cast %28 : vector<1x4x4xf32> to vector<4x4xf32>
    %30 = vector.extract_strided_slice %1 {offsets = [0, 36], sizes = [4, 1088], strides = [1, 1]} : vector<4x1158xf32> to vector<4x1088xf32>
    %cst_20 = arith.constant dense<0.000000e+00> : vector<4x1088xf32>
    %31 = tpu.matmul %29, %30, %cst_20 {dimension_numbers = #tpu.dot_dimension_numbers<[1], [0], [0], [1], [0, 0, 1, 1], [], []>} : vector<4x4xf32>, vector<4x1088xf32>, vector<4x1088xf32> -> vector<4x1088xf32>
    %32 = arith.addf %27, %31 : vector<4x1088xf32>
    %c6 = arith.constant 6 : index
    %c0_21 = arith.constant 0 : index
    %c0_22 = arith.constant 0 : index
    %33 = vector.load %arg2[%c6, %c0_21, %c0_22] : memref<9x4x4xf32, #tpu.memory_space<vmem>>, vector<1x4x4xf32>
    %34 = vector.shape_cast %33 : vector<1x4x4xf32> to vector<4x4xf32>
    %35 = vector.extract_strided_slice %1 {offsets = [0, 68], sizes = [4, 1088], strides = [1, 1]} : vector<4x1158xf32> to vector<4x1088xf32>
    %cst_23 = arith.constant dense<0.000000e+00> : vector<4x1088xf32>
    %36 = tpu.matmul %34, %35, %cst_23 {dimension_numbers = #tpu.dot_dimension_numbers<[1], [0], [0], [1], [0, 0, 1, 1], [], []>} : vector<4x4xf32>, vector<4x1088xf32>, vector<4x1088xf32> -> vector<4x1088xf32>
    %37 = arith.addf %32, %36 : vector<4x1088xf32>
    %c7 = arith.constant 7 : index
    %c0_24 = arith.constant 0 : index
    %c0_25 = arith.constant 0 : index
    %38 = vector.load %arg2[%c7, %c0_24, %c0_25] : memref<9x4x4xf32, #tpu.memory_space<vmem>>, vector<1x4x4xf32>
    %39 = vector.shape_cast %38 : vector<1x4x4xf32> to vector<4x4xf32>
    %40 = vector.extract_strided_slice %1 {offsets = [0, 69], sizes = [4, 1088], strides = [1, 1]} : vector<4x1158xf32> to vector<4x1088xf32>
    %cst_26 = arith.constant dense<0.000000e+00> : vector<4x1088xf32>
    %41 = tpu.matmul %39, %40, %cst_26 {dimension_numbers = #tpu.dot_dimension_numbers<[1], [0], [0], [1], [0, 0, 1, 1], [], []>} : vector<4x4xf32>, vector<4x1088xf32>, vector<4x1088xf32> -> vector<4x1088xf32>
    %42 = arith.addf %37, %41 : vector<4x1088xf32>
    %c8 = arith.constant 8 : index
    %c0_27 = arith.constant 0 : index
    %c0_28 = arith.constant 0 : index
    %43 = vector.load %arg2[%c8, %c0_27, %c0_28] : memref<9x4x4xf32, #tpu.memory_space<vmem>>, vector<1x4x4xf32>
    %44 = vector.shape_cast %43 : vector<1x4x4xf32> to vector<4x4xf32>
    %45 = vector.extract_strided_slice %1 {offsets = [0, 70], sizes = [4, 1088], strides = [1, 1]} : vector<4x1158xf32> to vector<4x1088xf32>
    %cst_29 = arith.constant dense<0.000000e+00> : vector<4x1088xf32>
    %46 = tpu.matmul %44, %45, %cst_29 {dimension_numbers = #tpu.dot_dimension_numbers<[1], [0], [0], [1], [0, 0, 1, 1], [], []>} : vector<4x4xf32>, vector<4x1088xf32>, vector<4x1088xf32> -> vector<4x1088xf32>
    %47 = arith.addf %42, %46 : vector<4x1088xf32>
    %c0_30 = arith.constant 0 : index
    %c0_31 = arith.constant 0 : index
    %48 = vector.load %arg3[%c0_30, %c0_31] : memref<1x1088xf32, #tpu.memory_space<vmem>>, vector<1x1088xf32>
    %49 = vector.broadcast %48 : vector<1x1088xf32> to vector<4x1088xf32>
    %50 = arith.mulf %47, %49 : vector<4x1088xf32>
    %cst_32 = arith.constant dense<0.000000e+00> : vector<4xf32>
    %51 = vector.multi_reduction <add>, %50, %cst_32 [1] : vector<4x1088xf32> to vector<4xf32>
    %52 = vector.shape_cast %51 : vector<4xf32> to vector<4x1xf32>
    %53 = arith.mulf %50, %50 : vector<4x1088xf32>
    %cst_33 = arith.constant dense<0.000000e+00> : vector<4xf32>
    %54 = vector.multi_reduction <add>, %53, %cst_33 [1] : vector<4x1088xf32> to vector<4xf32>
    %55 = vector.shape_cast %54 : vector<4xf32> to vector<4x1xf32>
    %cst_34 = arith.constant 9.765625E-4 : f32
    %56 = vector.broadcast %cst_34 : f32 to vector<4x1xf32>
    %57 = arith.mulf %52, %56 : vector<4x1xf32>
    %cst_35 = arith.constant 9.765625E-4 : f32
    %58 = vector.broadcast %cst_35 : f32 to vector<4x1xf32>
    %59 = arith.mulf %55, %58 : vector<4x1xf32>
    %60 = arith.mulf %57, %57 : vector<4x1xf32>
    %61 = arith.subf %59, %60 : vector<4x1xf32>
    %62 = vector.broadcast %57 : vector<4x1xf32> to vector<4x1088xf32>
    %63 = arith.subf %47, %62 : vector<4x1088xf32>
    %cst_36 = arith.constant 9.99999974E-6 : f32
    %64 = vector.broadcast %cst_36 : f32 to vector<4x1xf32>
    %65 = arith.addf %61, %64 : vector<4x1xf32>
    %66 = math.rsqrt %65 : vector<4x1xf32>
    %67 = vector.broadcast %66 : vector<4x1xf32> to vector<4x1088xf32>
    %68 = arith.mulf %63, %67 : vector<4x1088xf32>
    %c0_37 = arith.constant 0 : index
    %c0_38 = arith.constant 0 : index
    %c0_39 = arith.constant 0 : index
    %69 = vector.load %arg4[%c0_37, %c0_38, %c0_39] : memref<1x4x1088xf32, #tpu.memory_space<vmem>>, vector<1x4x1088xf32>
    %70 = vector.shape_cast %69 : vector<1x4x1088xf32> to vector<4x1088xf32>
    %71 = vector.shape_cast %68 : vector<4x1088xf32> to vector<1x4x1088xf32>
    tpu.vector_store %arg4[%c0_37, %c0_38, %c0_39], %71 {strides = array<i32>} : memref<1x4x1088xf32, #tpu.memory_space<vmem>>, vector<1x4x1088xf32>,
    return
  }
  func.func @transform_0(%arg0: i32) -> (i32, i32, i32) {
    %c0_i32 = arith.constant 0 : i32
    %c0_i32_0 = arith.constant 0 : i32
    %c0_i32_1 = arith.constant 0 : i32
    return %arg0, %c0_i32, %c0_i32_0 : i32, i32, i32
  }
  func.func @transform_1(%arg0: i32) -> (i32, i32, i32) {
    %c0_i32 = arith.constant 0 : i32
    %c0_i32_0 = arith.constant 0 : i32
    %c0_i32_1 = arith.constant 0 : i32
    %c0_i32_2 = arith.constant 0 : i32
    return %c0_i32, %c0_i32_0, %c0_i32_1 : i32, i32, i32
  }
  func.func @transform_2(%arg0: i32) -> (i32, i32) {
    %c0_i32 = arith.constant 0 : i32
    %c0_i32_0 = arith.constant 0 : i32
    %c0_i32_1 = arith.constant 0 : i32
    return %c0_i32, %c0_i32_0 : i32, i32
  }
  func.func @transform_3(%arg0: i32) -> (i32, i32, i32) {
    %c0_i32 = arith.constant 0 : i32
    %c0_i32_0 = arith.constant 0 : i32
    %c0_i32_1 = arith.constant 0 : i32
    return %arg0, %c0_i32, %c0_i32_0 : i32, i32, i32
  }
}

</mosaic_0001>

<bundles_post_ra>
// kernel: upsample_conv_layer.1
= control target key start
LH: loop header
LB: loop body
LE: loop exit
PB: predicated region body
PF: predicated region fallthrough
CT: control target
= control target key end

     0   :  { %s2881_s12 = smov 0   ;;  %s3492_s0 = inlined_call_operand.vmem [shape: f32[2,4,1158], index: 0, kind: input, shape index: {}]   ;;  %s3493_s1 = inlined_call_operand.vmem [shape: f32[9,4,4], index: 1, kind: input, shape index: {}]   ;;  %s3494_s2 = inlined_call_operand.vmem [shape: f32[1,1088], index: 2, kind: input, shape index: {}]   ;;  %s3495_s3 = inlined_call_operand.vmem [shape: f32[2,4,1088], index: 3, kind: output, shape index: {}]  }
   0x1 LB: > { %s2645_s13 = sadd.s32 4294967295, %s2851_s12   ;;  %p2649_p0 = scmp.ge.s32.totalorder %s2851_s12, 1  ;;  %s2851_s12 = sphi %s2881_s12, %s13_s12  }
   0x2   : > { %p137_p1 = scmp.lt.s32.totalorder %s2851_s12, 3 }
   0x4   : > { %p138_p2 = pnand %p2649_p0, %p137_p1 }
   0x5   : > { %p161_p3 = scmp.lt.s32.totalorder (!%p138_p2), %s2645_s13, 1  ;;  %s2853_s18 = smov (!%p138_p2), 127  }
   0x6   : > { %141 = sbr.rel (%p138_p2) target bundleno = 627 (0x273), region = 32  ;;  %s2854_s19 = smov (!%p138_p2), 126  }
   0x7   : > { %s2855_s20 = smov (!%p138_p2), 94   ;;  %s2856_s21 = smov (!%p138_p2), 93  }
   0x8   : > { %s2857_s22 = smov (!%p138_p2), 92   ;;  %s2858_s23 = smov (!%p138_p2), 60  }
   0x9   : > { %s2859_s28 = smov (!%p138_p2), 59   ;;  %s2860_s4 = smov (!%p138_p2), 58  }
   0xb   : > { %s3497_s13 = smov (!%p161_p3, %s2645_s13), 1  ;;  %vm219_vm0 = vcmask 1039360   ;;  %vm232_vm1 = vcmask 1043456   ;;  %vm228_vm2 = vcmask 31744   ;;  %vm686_vm3 = vcmask 1031168  }
   0xc   : > { %s2824_s14 = smul.u32 40, %s3497_s13  ;;  %vm942_vm4 = vcmask 769024   ;;  %vm1198_vm5 = vcmask 760832   ;;  %vm1454_vm6 = vcmask 752640   ;;  %vm1713_vm7 = vcmask 490496  }
   0xd   : > { %vm1973_vm8 = vcmask 482304   ;;  %vm2233_vm9 = vcmask 474112   ;;  %vm2499_vm10 = vcmask 519168  }
   0xe   : > { %s165_s17 = scalar_lea.vmem %s3492_s0, %s2824_s14 }
   0xf   : > { %v2895_v0 = vld [vmem:[%s165_s17 + $0x8] sm:$0xff]  ;;  %v2897_v1 = vld [vmem:[%s165_s17] sm:$0xff]  ;;  %v2900_v2 = vld [vmem:[%s165_s17 + $0x10] sm:$0xff] }
  0x10   : > { %186 = vst [vmem:[#allocation1 + $0x10] ss:$2 sm:$0xff] %v2895_v0  ;;  %v2902_v3 = vld [vmem:[%s165_s17 + $0x18] sm:$0xff]  ;;  %v2907_v4 = vld [vmem:[%s165_s17 + $0x20] sm:$0xff] }
  0x11   : > { %184 = vst [vmem:[#allocation1] ss:$2 sm:$0xff] %v2897_v1 }
  0x12   : > { %188 = vst [vmem:[#allocation1 + $0x20] ss:$2 sm:$0xff] %v2900_v2 }
  0x13   : > { %190 = vst [vmem:[#allocation1 + $0x30] ss:$2 sm:$0xff] %v2902_v3 }
  0x17   : > { %v193_v5 = vld.sshfl [vmem:[#allocation1 + $0x10] sm:$0xff pattern:$0x75316420]  ;;  %v194_v6 = vld.sshfl [vmem:[#allocation1 + $0x18] sm:$0xff pattern:$0x75316420] }
  0x18   : > { %205 = vrot.lane.b32.xlu0 %v193_v5, %s2853_s18  ;;  %v191_v7 = vld.sshfl [vmem:[#allocation1] sm:$0xff pattern:$0x75316420]  ;;  %433 = vst [vmem:[#allocation1 + $0x10] ss:$2 sm:$0xff] %v2895_v0 }
  0x19   : > { %201 = vrot.lane.b32.xlu1 %v191_v7, %s2853_s18  ;;  %v195_v8 = vld.sshfl [vmem:[#allocation1 + $0x20] sm:$0xff pattern:$0x75316420]  ;;  %v192_v9 = vld.sshfl [vmem:[#allocation1 + $0x8] sm:$0xff pattern:$0x75316420] }
  0x1a   : > { %209 = vrot.lane.b32.xlu2 %v195_v8, %s2853_s18  ;;  %199 = vst [vmem:[#allocation1] ss:$2 sm:$0xff] %v2907_v4  ;;  %v197_v10 = vld.sshfl [vmem:[#allocation1 + $0x30] sm:$0xff pattern:$0x75316420] }
  0x1b   : > { %v198_v11 = vld.sshfl [vmem:[#allocation1 + $0x38] sm:$0xff pattern:$0x75316420]  ;;  %v196_v12 = vld.sshfl [vmem:[#allocation1 + $0x28] sm:$0xff pattern:$0x75316420] }
  0x1c   : > { %437 = vst [vmem:[#allocation1 + $0x30] ss:$2 sm:$0xff] %v2902_v3 }
  0x1d   : > { %435 = vst [vmem:[#allocation1 + $0x20] ss:$2 sm:$0xff] %v2900_v2 }
  0x1f   : > { %v2916_v13 = vld.sshfl [vmem:[#allocation1 + $0x10] sm:$0xff pattern:$0x75316420]  ;;  %v2918_v14 = vld.sshfl [vmem:[#allocation1 + $0x18] sm:$0xff pattern:$0x75316420] }
  0x20   : > { %207 = vrot.lane.b32.xlu0 %v194_v6, %s2853_s18  ;;  %653 = vst [vmem:[#allocation1 + $0x10] ss:$2 sm:$0xff] %v2895_v0 }
  0x21   : > { %203 = vrot.lane.b32.xlu1 %v192_v9, %s2853_s18  ;;  %v200_v15 = vld.sshfl [vmem:[#allocation1] sm:$0xff pattern:$0x75316420] }
  0x22   : > { %213 = vrot.lane.b32.xlu2 %v197_v10, %s2853_s18  ;;  %431 = vst [vmem:[#allocation1] ss:$2 sm:$0xff] %v2897_v1 }
  0x23   : > { %v2925_v16 = vld.sshfl [vmem:[#allocation1 + $0x30] sm:$0xff pattern:$0x75316420]  ;;  %v2927_v17 = vld.sshfl [vmem:[#allocation1 + $0x38] sm:$0xff pattern:$0x75316420] }
  0x24   : > { %657 = vst [vmem:[#allocation1 + $0x30] ss:$2 sm:$0xff] %v2902_v3  ;;  %v2930_v18 = vld.sshfl [vmem:[#allocation1 + $0x20] sm:$0xff pattern:$0x75316420] }
  0x25   : > { %v2932_v19 = vld.sshfl [vmem:[#allocation1 + $0x28] sm:$0xff pattern:$0x75316420] }
  0x26   : > { %655 = vst [vmem:[#allocation1 + $0x20] ss:$2 sm:$0xff] %v2900_v2 }
  0x27   : > { %v660_v20 = vld.sshfl [vmem:[#allocation1 + $0x10] sm:$0xff pattern:$0x75316420]  ;;  %v661_v21 = vld.sshfl [vmem:[#allocation1 + $0x18] sm:$0xff pattern:$0x75316420] }
  0x28   : > { %909 = vst [vmem:[#allocation1 + $0x10] ss:$2 sm:$0xff] %v2895_v0  ;;  %215 = vrot.lane.b32.xlu0 %v198_v11, %s2853_s18 }
  0x29   : > { %211 = vrot.lane.b32.xlu1 %v196_v12, %s2853_s18  ;;  %v2938_v22 = vld.sshfl [vmem:[#allocation1] sm:$0xff pattern:$0x75316420]  ;;  %v2940_v23 = vld.sshfl [vmem:[#allocation1 + $0x8] sm:$0xff pattern:$0x75316420] }
  0x2a   : > { %217 = vrot.lane.b32.xlu2 %v200_v15, %s2853_s18  ;;  %446 = vst [vmem:[#allocation1] ss:$2 sm:$0xff] %v2907_v4 }
  0x2b   : > { %v664_v24 = vld.sshfl [vmem:[#allocation1 + $0x30] sm:$0xff pattern:$0x75316420]  ;;  %v665_v25 = vld.sshfl [vmem:[#allocation1 + $0x38] sm:$0xff pattern:$0x75316420] }
  0x2c   : > { %913 = vst [vmem:[#allocation1 + $0x30] ss:$2 sm:$0xff] %v2902_v3 }
  0x2d   : > { %v662_v26 = vld.sshfl [vmem:[#allocation1 + $0x20] sm:$0xff pattern:$0x75316420]  ;;  %v663_v27 = vld.sshfl [vmem:[#allocation1 + $0x28] sm:$0xff pattern:$0x75316420] }
  0x2e   : > { %911 = vst [vmem:[#allocation1 + $0x20] ss:$2 sm:$0xff] %v2900_v2 }
  0x2f   : > { %v916_v28 = vld.sshfl [vmem:[#allocation1 + $0x10] sm:$0xff pattern:$0x75316420]  ;;  %v917_v29 = vld.sshfl [vmem:[#allocation1 + $0x18] sm:$0xff pattern:$0x75316420] }
  0x30   : > { %676 = vrot.lane.b32.xlu0 %v662_v26, %s2854_s19  ;;  %1165 = vst [vmem:[#allocation1 + $0x10] ss:$2 sm:$0xff] %v2895_v0 }
  0x31   : > { %678 = vrot.lane.b32.xlu1 %v663_v27, %s2854_s19  ;;  %v2947_v30 = vld.sshfl [vmem:[#allocation1] sm:$0xff pattern:$0x75316420] }
  0x32   : > { %672 = vrot.lane.b32.xlu2 %v660_v20, %s2854_s19  ;;  %651 = vst [vmem:[#allocation1] ss:$2 sm:$0xff] %v2897_v1 }
  0x33   : > { %v920_v38 = vld.sshfl [vmem:[#allocation1 + $0x30] sm:$0xff pattern:$0x75316420]  ;;  %v921_v39 = vld.sshfl [vmem:[#allocation1 + $0x38] sm:$0xff pattern:$0x75316420] }
  0x34   : > { %1169 = vst [vmem:[#allocation1 + $0x30] ss:$2 sm:$0xff] %v2902_v3 }
  0x35   : > { %v918_v31 = vld.sshfl [vmem:[#allocation1 + $0x20] sm:$0xff pattern:$0x75316420]  ;;  %v919_v32 = vld.sshfl [vmem:[#allocation1 + $0x28] sm:$0xff pattern:$0x75316420] }
  0x36   : > { %1167 = vst [vmem:[#allocation1 + $0x20] ss:$2 sm:$0xff] %v2900_v2 }
  0x37   : > { %v1173_v33 = vld.sshfl [vmem:[#allocation1 + $0x18] sm:$0xff pattern:$0x75316420]  ;;  %v1172_v36 = vld.sshfl [vmem:[#allocation1 + $0x10] sm:$0xff pattern:$0x75316420] }
  0x38   : > { %680 = vrot.lane.b32.xlu0 %v664_v24, %s2854_s19  ;;  %1421 = vst [vmem:[#allocation1 + $0x10] ss:$2 sm:$0xff] %v2895_v0 }
  0x39   : > { %928 = vrot.lane.b32.xlu1 %v916_v28, %s2855_s20  ;;  %v659_v34 = vld.sshfl [vmem:[#allocation1 + $0x8] sm:$0xff pattern:$0x75316420]  ;;  %v658_v35 = vld.sshfl [vmem:[#allocation1] sm:$0xff pattern:$0x75316420] }
  0x3a   : > { %674 = vrot.lane.b32.xlu2 %v661_v21, %s2854_s19  ;;  %666 = vst [vmem:[#allocation1] ss:$2 sm:$0xff] %v2907_v4  ;;  %v2652_v28 = vld [vmem:[%s3493_s1 + $0x4] sm:$0xf] }
  0x3b   : > { %v1177_v45 = vld.sshfl [vmem:[#allocation1 + $0x38] sm:$0xff pattern:$0x75316420]  ;;  %v1176_v46 = vld.sshfl [vmem:[#allocation1 + $0x30] sm:$0xff pattern:$0x75316420] }
  0x3c   : > { %1425 = vst [vmem:[#allocation1 + $0x30] ss:$2 sm:$0xff] %v2902_v3 }
  0x3d   : > { %v1174_v40 = vld.sshfl [vmem:[#allocation1 + $0x20] sm:$0xff pattern:$0x75316420]  ;;  %v1175_v43 = vld.sshfl [vmem:[#allocation1 + $0x28] sm:$0xff pattern:$0x75316420] }
  0x3e   : > { %1423 = vst [vmem:[#allocation1 + $0x20] ss:$2 sm:$0xff] %v2900_v2 }
  0x3f   : > { %v1428_v51 = vld.sshfl [vmem:[#allocation1 + $0x10] sm:$0xff pattern:$0x75316420]  ;;  %v1429_v55 = vld.sshfl [vmem:[#allocation1 + $0x18] sm:$0xff pattern:$0x75316420] }
  0x40   : > { %932 = vrot.lane.b32.xlu0 %v918_v31, %s2855_s20  ;;  %1677 = vst [vmem:[#allocation1 + $0x10] ss:$2 sm:$0xff] %v2895_v0 }
  0x41   : > { %670 = vrot.lane.b32.xlu1 %v659_v34, %s2854_s19  ;;  %v667_v37 = vld.sshfl [vmem:[#allocation1] sm:$0xff pattern:$0x75316420] }
  0x42   : > { %682 = vrot.lane.b32.xlu2 %v665_v25, %s2854_s19  ;;  %907 = vst [vmem:[#allocation1] ss:$2 sm:$0xff] %v2897_v1 }
  0x43   : > { %v1433_v58 = vld.sshfl [vmem:[#allocation1 + $0x38] sm:$0xff pattern:$0x75316420]  ;;  %v1432_v59 = vld.sshfl [vmem:[#allocation1 + $0x30] sm:$0xff pattern:$0x75316420] }
  0x44   : > { %1681 = vst [vmem:[#allocation1 + $0x30] ss:$2 sm:$0xff] %v2902_v3 }
  0x45   : > { %v1431_v50 = vld.sshfl [vmem:[#allocation1 + $0x28] sm:$0xff pattern:$0x75316420]  ;;  %v1430_v54 = vld.sshfl [vmem:[#allocation1 + $0x20] sm:$0xff pattern:$0x75316420] }
  0x46   : > { %1679 = vst [vmem:[#allocation1 + $0x20] ss:$2 sm:$0xff] %v2900_v2 }
  0x47   : > { %v1684_v11 = vld.sshfl [vmem:[#allocation1 + $0x10] sm:$0xff pattern:$0x75316420]  ;;  %v1685_v12 = vld.sshfl [vmem:[#allocation1 + $0x18] sm:$0xff pattern:$0x75316420] }
  0x48   : > { %668 = vrot.lane.b32.xlu0 %v658_v35, %s2854_s19  ;;  %1937 = vst [vmem:[#allocation1 + $0x10] ss:$2 sm:$0xff] %v2895_v0 }
  0x49   : > { %684 = vrot.lane.b32.xlu1 %v667_v37, %s2854_s19  ;;  %v915_v41 = vld.sshfl [vmem:[#allocation1 + $0x8] sm:$0xff pattern:$0x75316420]  ;;  %v914_v42 = vld.sshfl [vmem:[#allocation1] sm:$0xff pattern:$0x75316420] }
  0x4a   : > { %930 = vrot.lane.b32.xlu2 %v917_v29, %s2855_s20  ;;  %922 = vst [vmem:[#allocation1] ss:$2 sm:$0xff] %v2907_v4 }
  0x4b   : > { %v1688_v9 = vld.sshfl [vmem:[#allocation1 + $0x30] sm:$0xff pattern:$0x75316420]  ;;  %v2999_v10 = vld.sshfl [vmem:[#allocation1 + $0x38] sm:$0xff pattern:$0x75316420] }
  0x4c   : > { %1941 = vst [vmem:[#allocation1 + $0x30] ss:$2 sm:$0xff] %v2902_v3 }
  0x4d   : > { %v1687_v60 = vld.sshfl [vmem:[#allocation1 + $0x28] sm:$0xff pattern:$0x75316420]  ;;  %v1686_v61 = vld.sshfl [vmem:[#allocation1 + $0x20] sm:$0xff pattern:$0x75316420] }
  0x4e   : > { %1939 = vst [vmem:[#allocation1 + $0x20] ss:$2 sm:$0xff] %v2900_v2 }
  0x50   : > { %938 = vrot.lane.b32.xlu0 %v921_v39, %s2855_s20 }
  0x51   : > { %1186 = vrot.lane.b32.xlu1 %v1173_v33, %s2856_s21  ;;  %v923_v44 = vld.sshfl [vmem:[#allocation1] sm:$0xff pattern:$0x75316420] }
  0x52   : > { %934 = vrot.lane.b32.xlu2 %v919_v32, %s2855_s20  ;;  %1163 = vst [vmem:[#allocation1] ss:$2 sm:$0xff] %v2897_v1 }
  0x55   : > { %v3029_v33 = vld.sshfl [vmem:[#allocation1 + $0x20] sm:$0xff pattern:$0x75316420]  ;;  %v3031_v34 = vld.sshfl [vmem:[#allocation1 + $0x28] sm:$0xff pattern:$0x75316420] }
  0x56   : > { %2199 = vst [vmem:[#allocation1 + $0x20] ss:$2 sm:$0xff] %v2900_v2 }
  0x58   : > { %924 = vrot.lane.b32.xlu0 %v914_v42, %s2855_s20 }
  0x59   : > { %926 = vrot.lane.b32.xlu1 %v915_v41, %s2855_s20  ;;  %v1171_v47 = vld.sshfl [vmem:[#allocation1 + $0x8] sm:$0xff pattern:$0x75316420]  ;;  %v1170_v48 = vld.sshfl [vmem:[#allocation1] sm:$0xff pattern:$0x75316420] }
  0x5a   : > { %936 = vrot.lane.b32.xlu2 %v920_v38, %s2855_s20  ;;  %1178 = vst [vmem:[#allocation1] ss:$2 sm:$0xff] %v2907_v4 }
  0x60   : > { %1184 = vrot.lane.b32.xlu0 %v1172_v36, %s2856_s21 }
  0x61   : > { %940 = vrot.lane.b32.xlu1 %v923_v44, %s2855_s20  ;;  %v1179_v49 = vld.sshfl [vmem:[#allocation1] sm:$0xff pattern:$0x75316420]  ;;  %v3058_v44 = vld.sshfl [vmem:[#allocation1 + $0x30] sm:$0xff pattern:$0x75316420] }
  0x62   : > { %1192 = vrot.lane.b32.xlu2 %v1176_v46, %s2856_s21  ;;  %1419 = vst [vmem:[#allocation1] ss:$2 sm:$0xff] %v2897_v1  ;;  %v1945_v46 = vld.sshfl [vmem:[#allocation1 + $0x18] sm:$0xff pattern:$0x75316420] }
  0x68   : > { %1182 = vrot.lane.b32.xlu0 %v1171_v47, %s2856_s21 }
  0x69   : > { %1188 = vrot.lane.b32.xlu1 %v1174_v40, %s2856_s21  ;;  %v1427_v52 = vld.sshfl [vmem:[#allocation1 + $0x8] sm:$0xff pattern:$0x75316420]  ;;  %v1426_v53 = vld.sshfl [vmem:[#allocation1] sm:$0xff pattern:$0x75316420] }
  0x6a   : > { %1180 = vrot.lane.b32.xlu2 %v1170_v48, %s2856_s21  ;;  %1434 = vst [vmem:[#allocation1] ss:$2 sm:$0xff] %v2907_v4 }
  0x70   : > { %1194 = vrot.lane.b32.xlu0 %v1177_v45, %s2856_s21  ;;  %v176_v45 = vld [vmem:[%s3493_s1] sm:$0xf] }
  0x71   : > { %1190 = vrot.lane.b32.xlu1 %v1175_v43, %s2856_s21  ;;  %v1435_v56 = vld.sshfl [vmem:[#allocation1] sm:$0xff pattern:$0x75316420]  ;;  %v3056_v43 = vld.sshfl [vmem:[#allocation1 + $0x38] sm:$0xff pattern:$0x75316420] }
  0x72   : > { %1196 = vrot.lane.b32.xlu2 %v1179_v49, %s2856_s21  ;;  %1675 = vst [vmem:[#allocation1] ss:$2 sm:$0xff] %v2897_v1 }
  0x73   : > { %2201 = vst [vmem:[#allocation1 + $0x30] ss:$2 sm:$0xff] %v2902_v3  ;;  %v1944_v3 = vld.sshfl [vmem:[#allocation1 + $0x10] sm:$0xff pattern:$0x75316420] }
  0x74   : > { %v2983_v57 = vpop.permute.xlu2 %209  ;;  %2197 = vst [vmem:[#allocation1 + $0x10] ss:$2 sm:$0xff] %v2895_v0 }
  0x78   : > { %1438 = vrot.lane.b32.xlu0 %v1427_v52, %s2857_s22 }
  0x79   : > { %1440 = vrot.lane.b32.xlu1 %v1428_v51, %s2857_s22  ;;  %v1683_v62 = vld.sshfl [vmem:[#allocation1 + $0x8] sm:$0xff pattern:$0x75316420]  ;;  %v1682_v63 = vld.sshfl [vmem:[#allocation1] sm:$0xff pattern:$0x75316420] }
  0x7a   : > { %1442 = vrot.lane.b32.xlu2 %v1429_v55, %s2857_s22  ;;  %1690 = vst [vmem:[#allocation1] ss:$2 sm:$0xff] %v2907_v4  ;;  %v2689_v51 = vld [vmem:[%s3493_s1 + $0x8] sm:$0xf] }
  0x7c   : > { %v214_v5 = vpop.permute.xlu2 %213 }
  0x80   : > { %1436 = vrot.lane.b32.xlu0 %v1426_v53, %s2857_s22 }
  0x81   : > { %1446 = vrot.lane.b32.xlu1 %v1431_v50, %s2857_s22  ;;  %v2994_v6 = vld.sshfl [vmem:[#allocation1] sm:$0xff pattern:$0x75316420]  ;;  %v2996_v7 = vld.sshfl [vmem:[#allocation1 + $0x8] sm:$0xff pattern:$0x75316420] }
  0x82   : > { %1448 = vrot.lane.b32.xlu2 %v1432_v59, %s2857_s22  ;;  %1935 = vst [vmem:[#allocation1] ss:$2 sm:$0xff] %v2897_v1 }
  0x84   : > { %v218_v8 = vpop.permute.xlu2 %217 }
  0x88   : > { %1444 = vrot.lane.b32.xlu0 %v1430_v54, %s2857_s22 }
  0x89   : > { %1450 = vrot.lane.b32.xlu1 %v1433_v58, %s2857_s22  ;;  %v1942_v36 = vld.sshfl [vmem:[#allocation1] sm:$0xff pattern:$0x75316420]  ;;  %v1943_v37 = vld.sshfl [vmem:[#allocation1 + $0x8] sm:$0xff pattern:$0x75316420] }
  0x8a   : > { %v206_v15 = vpop.permute.xlu0 %205  ;;  %1693 = vrot.lane.b32.xlu2 %v1682_v63, %s2858_s23  ;;  %1950 = vst [vmem:[#allocation1] ss:$2 sm:$0xff] %v2907_v4 }
  0x8b   : > { %v202_v20 = vpop.permute.xlu1 %201 }
  0x8c   : > { %v3006_v21 = vpop.permute.xlu2 %672 }
  0x90   : > { %1695 = vrot.lane.b32.xlu0 %v1683_v62, %s2858_s23 }
  0x91   : > { %1452 = vrot.lane.b32.xlu1 %v1435_v56, %s2857_s22  ;;  %v3075_v48 = vld.sshfl [vmem:[#allocation1] sm:$0xff pattern:$0x75316420] }
  0x92   : > { %v208_v24 = vpop.permute.xlu0 %207  ;;  %1697 = vrot.lane.b32.xlu2 %v1684_v11, %s2858_s23  ;;  %v2708_v11 = vld [vmem:[%s3493_s1 + $0xc] sm:$0xf] }
  0x93   : > { %v204_v25 = vpop.permute.xlu1 %203  ;;  %v222_v26 = vsel %vm219_vm0, %v206_v15, %v208_v24  ;;  %v223_v27 = vsel %vm219_vm0, %v208_v24, %v2983_v57  ;;  %v2208_v24 = vld.sshfl [vmem:[#allocation1 + $0x30] sm:$0xff pattern:$0x75316420] }
  0x94   : > { %v220_v29 = vsel %vm219_vm0, %v202_v20, %v204_v25  ;;  %v221_v31 = vsel %vm219_vm0, %v204_v25, %v206_v15  ;;  %2657 = vmatpush.msk.msra.mxu2 %vm232_vm1, %v222_v26  ;;  %2659 = vmatpush.msk.msra.mxu3 %vm232_vm1, %v223_v27  ;;  %v3021_v32 = vpop.permute.xlu2 %674 }
  0x95   : > { %2653 = vmatpush.msk.msra.mxu0 %vm232_vm1, %v220_v29  ;;  %2655 = vmatpush.msk.msra.mxu1 %vm232_vm1, %v221_v31 }
  0x96   : > { %2654 = vmatmul.msk.f32.vlgmr.msra.gmra.mxu0 %vm228_vm2, %v2652_v28  ;;  %2656 = vmatmul.msk.f32.vlgmr.msra.gmra.mxu1 %vm228_vm2, %v2652_v28 }
  0x97   : > { %2660 = vmatmul.msk.f32.vlgmr.msra.gmra.mxu3 %vm228_vm2, %v2652_v28  ;;  %2658 = vmatmul.msk.f32.vlgmr.msra.gmra.mxu2 %vm228_vm2, %v2652_v28 }
  0x98   : > { %1701 = vrot.lane.b32.xlu0 %v1686_v61, %s2858_s23 }
  0x99   : > { %1703 = vrot.lane.b32.xlu1 %v1687_v60, %s2858_s23 }
  0x9a   : > { %v216_v35 = vpop.permute.xlu0 %215  ;;  %1699 = vrot.lane.b32.xlu2 %v1685_v12, %s2858_s23 }
  0x9b   : > { %v212_v38 = vpop.permute.xlu1 %211  ;;  %v226_v39 = vsel %vm219_vm0, %v214_v5, %v216_v35  ;;  %v227_v40 = vsel %vm219_vm0, %v216_v35, %v218_v8  ;;  %v2209_v35 = vld.sshfl [vmem:[#allocation1 + $0x38] sm:$0xff pattern:$0x75316420] }
  0x9c   : > { %v224_v41 = vsel %vm219_vm0, %v2983_v57, %v212_v38  ;;  %v225_v42 = vsel %vm219_vm0, %v212_v38, %v214_v5  ;;  %2665 = vmatpush.msk.msrb.mxu2 %vm232_vm1, %v226_v39  ;;  %2667 = vmatpush.msk.msrb.mxu3 %vm232_vm1, %v227_v40  ;;  %v3045_v2 = vpop.permute.xlu2 %682 }
  0x9d   : > { %2661 = vmatpush.msk.msrb.mxu0 %vm232_vm1, %v224_v41  ;;  %2663 = vmatpush.msk.msrb.mxu1 %vm232_vm1, %v225_v42  ;;  %v2727_v41 = vld [vmem:[%s3493_s1 + $0x10] sm:$0xf] }
  0x9e   : > { %2662 = vmatmul.msk.f32.vlgmr.msrb.gmra.mxu0 %vm228_vm2, %v2652_v28  ;;  %2664 = vmatmul.msk.f32.vlgmr.msrb.gmra.mxu1 %vm228_vm2, %v2652_v28 }
  0x9f   : > { %2669 = vmatpush.msk.msra.mxu0 %vm232_vm1, %v218_v8  ;;  %2668 = vmatmul.msk.f32.vlgmr.msrb.gmra.mxu3 %vm228_vm2, %v2652_v28  ;;  %v2204_v8 = vld.sshfl [vmem:[#allocation1 + $0x10] sm:$0xff pattern:$0x75316420] }
  0xa0   : > { %1705 = vrot.lane.b32.xlu0 %v1688_v9, %s2858_s23  ;;  %2671 = vmatpush.msk.msra.mxu1 %vm232_vm1, %v2938_v22  ;;  %v3073_v22 = vld.sshfl [vmem:[#allocation1 + $0x8] sm:$0xff pattern:$0x75316420] }
  0xa1   : > { %1709 = vrot.lane.b32.xlu1 %v2994_v6, %s2858_s23  ;;  %2666 = vmatmul.msk.f32.vlgmr.msrb.gmra.mxu2 %vm228_vm2, %v2652_v28  ;;  %2195 = vst [vmem:[#allocation1] ss:$2 sm:$0xff] %v2897_v1  ;;  %v2205_v6 = vld.sshfl [vmem:[#allocation1 + $0x18] sm:$0xff pattern:$0x75316420] }
  0xa2   : > { %v3067_v47 = vpop.permute.xlu0 %676  ;;  %2675 = vmatpush.msk.msra.mxu3 %vm232_vm1, %v2916_v13  ;;  %2677 = vmatpush.msk.msrb.mxu0 %vm232_vm1, %v2918_v14 }
  0xa3   : > { %v3077_v49 = vpop.permute.xlu1 %678  ;;  %2679 = vmatpush.msk.msrb.mxu1 %vm232_vm1, %v2930_v18  ;;  %2673 = vmatpush.msk.msra.mxu2 %vm232_vm1, %v2940_v23  ;;  %v690_v18 = vsel %vm686_vm3, %v3021_v32, %v3067_v47 }
  0xa4   : > { %v3084_v50 = vpop.permute.xlu2 %930  ;;  %2683 = vmatpush.msk.msrb.mxu3 %vm232_vm1, %v2925_v16  ;;  %1711 = vrot.lane.b32.xlu2 %v2996_v7, %s2858_s23  ;;  %v691_v59 = vsel %vm686_vm3, %v3067_v47, %v3077_v49 }
  0xa5   : > { %2681 = vmatpush.msk.msrb.mxu2 %vm232_vm1, %v2932_v19 }
  0xa6   : > { %2670 = vmatmul.msk.f32.vlgmr.msra.gmra.mxu0 %vm228_vm2, %v2652_v28  ;;  %2672 = vmatmul.msk.f32.vlgmr.msra.gmra.mxu1 %vm228_vm2, %v176_v45 }
  0xa7   : > { %2676 = vmatmul.msk.f32.vlgmr.msra.gmra.mxu3 %vm228_vm2, %v176_v45  ;;  %2685 = vmatpush.msk.msra.mxu0 %vm232_vm1, %v2927_v17  ;;  %v689_v17 = vsel %vm686_vm3, %v3006_v21, %v3021_v32 }
  0xa8   : > { %1707 = vrot.lane.b32.xlu0 %v2999_v10, %s2858_s23  ;;  %2687 = vmatpush.msk.msra.mxu1 %vm232_vm1, %v2947_v30  ;;  %v3104_v1 = vld.sshfl [vmem:[#allocation1] sm:$0xff pattern:$0x75316420]  ;;  %v3106_v13 = vld.sshfl [vmem:[#allocation1 + $0x8] sm:$0xff pattern:$0x75316420] }
  0xa9   : > { %1953 = vrot.lane.b32.xlu1 %v1942_v36, %s2859_s28  ;;  %2674 = vmatmul.msk.f32.vlgmr.msra.gmra.mxu2 %vm228_vm2, %v176_v45  ;;  %2210 = vst [vmem:[#allocation1] ss:$2 sm:$0xff] %v2907_v4  ;;  %s2825_s23 = smul.u32 36, %s3497_s13 }
  0xaa   : > { %v681_v0 = vpop.permute.xlu0 %680 }
  0xab   : > { %v3108_v14 = vpop.permute.xlu1 %928  ;;  %v692_v52 = vsel %vm686_vm3, %v3077_v49, %v681_v0  ;;  %v693_v53 = vsel %vm686_vm3, %v681_v0, %v3045_v2  ;;  %s170_s25 = scalar_lea.vmem %s3495_s3, %s2825_s23 }
  0xac   : > { %v3111_v16 = vpop.permute.xlu2 %934  ;;  %1955 = vrot.lane.b32.xlu2 %v1943_v37, %s2859_s28  ;;  %v945_v60 = vsel %vm942_vm4, %v3108_v14, %v3084_v50 }
  0xae   : > { %2678 = vmatmul.msk.f32.vlgmr.msrb.gmra.mxu0 %vm228_vm2, %v176_v45  ;;  %2680 = vmatmul.msk.f32.vlgmr.msrb.gmra.mxu1 %vm228_vm2, %v176_v45 }
  0xaf   : > { %2694 = vmatpush.msk.msrb.mxu0 %vm232_vm1, %v689_v17  ;;  %2696 = vmatpush.msk.msrb.mxu1 %vm232_vm1, %v690_v18 }
  0xb0   : > { %1959 = vrot.lane.b32.xlu0 %v1945_v46, %s2859_s28  ;;  %2684 = vmatmul.msk.f32.vlgmr.msrb.gmra.mxu3 %vm228_vm2, %v176_v45 }
  0xb1   : > { %1961 = vrot.lane.b32.xlu1 %v3029_v33, %s2859_s28  ;;  %2682 = vmatmul.msk.f32.vlgmr.msrb.gmra.mxu2 %vm228_vm2, %v176_v45  ;;  %v2207_v33 = vld.sshfl [vmem:[#allocation1 + $0x28] sm:$0xff pattern:$0x75316420] }
  0xb2   : > { %v3129_v4 = vpop.permute.xlu0 %932 }
  0xb3   : > { %v671_v19 = vpop.permute.xlu1 %670  ;;  %v946_v7 = vsel %vm942_vm4, %v3084_v50, %v3129_v4  ;;  %v947_v25 = vsel %vm942_vm4, %v3129_v4, %v3111_v16 }
  0xb4   : > { %v688_v23 = vsel %vm686_vm3, %v671_v19, %v3006_v21  ;;  %v3133_v30 = vpop.permute.xlu2 %936  ;;  %1957 = vrot.lane.b32.xlu2 %v1944_v3, %s2859_s28  ;;  %v2206_v21 = vld.sshfl [vmem:[#allocation1 + $0x20] sm:$0xff pattern:$0x75316420] }
  0xb5   : > { %2692 = vmatpush.msk.msra.mxu3 %vm232_vm1, %v688_v23  ;;  %v948_v26 = vsel %vm942_vm4, %v3111_v16, %v3133_v30 }
  0xb6   : > { %2686 = vmatmul.msk.f32.vlgmr.msra.gmra.mxu0 %vm228_vm2, %v176_v45  ;;  %2688 = vmatmul.msk.f32.vlgmr.msra.gmra.mxu1 %vm228_vm2, %v176_v45 }
  0xb7   : > { %2700 = vmatpush.msk.msrb.mxu3 %vm232_vm1, %v692_v52  ;;  %2702 = vmatpush.msk.msra.mxu0 %vm232_vm1, %v693_v53 }
  0xb8   : > { %1963 = vrot.lane.b32.xlu0 %v3031_v34, %s2859_s28  ;;  %2693 = vmatmul.msk.f32.vlgmr.msra.gmra.mxu3 %vm228_vm2, %v2689_v51  ;;  %v2211_v34 = vld.sshfl [vmem:[#allocation1] sm:$0xff pattern:$0x75316420] }
  0xb9   : > { %1967 = vrot.lane.b32.xlu1 %v3056_v43, %s2859_s28 }
  0xba   : > { %v669_v54 = vpop.permute.xlu0 %668 }
  0xbb   : > { %v687_v55 = vsel %vm686_vm3, %v669_v54, %v671_v19  ;;  %v685_v56 = vpop.permute.xlu1 %684 }
  0xbc   : > { %v694_v57 = vsel %vm686_vm3, %v3045_v2, %v685_v56  ;;  %2690 = vmatpush.msk.msra.mxu2 %vm232_vm1, %v687_v55  ;;  %v3157_v58 = vpop.permute.xlu2 %1192  ;;  %1969 = vrot.lane.b32.xlu2 %v3075_v48, %s2859_s28  ;;  %v2212_v2 = vld.sshfl [vmem:[#allocation1 + $0x8] sm:$0xff pattern:$0x75316420] }
  0xbd   : > { %2704 = vmatpush.msk.msra.mxu1 %vm232_vm1, %v694_v57  ;;  %2691 = vmatmul.msk.f32.vlgmr.msra.gmra.mxu2 %vm228_vm2, %v2689_v51 }
  0xbe   : > { %2695 = vmatmul.msk.f32.vlgmr.msrb.gmra.mxu0 %vm228_vm2, %v2689_v51  ;;  %2697 = vmatmul.msk.f32.vlgmr.msrb.gmra.mxu1 %vm228_vm2, %v2689_v51 }
  0xbf   : > { %2698 = vmatpush.msk.msrb.mxu2 %vm232_vm1, %v691_v59  ;;  %2713 = vmatpush.msk.msrb.mxu1 %vm232_vm1, %v945_v60  ;;  %v2765_v59 = vld [vmem:[%s3493_s1 + $0x18] sm:$0xf] }
  0xc0   : > { %1965 = vrot.lane.b32.xlu0 %v3058_v44, %s2859_s28  ;;  %2701 = vmatmul.msk.f32.vlgmr.msrb.gmra.mxu3 %vm228_vm2, %v2689_v51 }
  0xc1   : > { %2706 = vmatpush.msk.msra.mxu2 %vm232_vm1, %v685_v56  ;;  %1971 = vrot.lane.b32.xlu1 %v3073_v22, %s2859_s28 }
  0xc2   : > { %v939_v61 = vpop.permute.xlu0 %938 }
  0xc3   : > { %v1187_v62 = vpop.permute.xlu1 %1186  ;;  %v949_v63 = vsel %vm942_vm4, %v3133_v30, %v939_v61 }
  0xc4   : > { %v1181_v5 = vpop.permute.xlu2 %1180  ;;  %2217 = vrot.lane.b32.xlu2 %v2204_v8, %s2860_s4 }
  0xc5   : > { %2699 = vmatmul.msk.f32.vlgmr.msrb.gmra.mxu2 %vm228_vm2, %v2689_v51 }
  0xc6   : > { %2703 = vmatmul.msk.f32.vlgmr.msra.gmra.mxu0 %vm228_vm2, %v2689_v51  ;;  %2705 = vmatmul.msk.f32.vlgmr.msra.gmra.mxu1 %vm228_vm2, %v2689_v51 }
  0xc7   : > { %2715 = vmatpush.msk.msrb.mxu2 %vm232_vm1, %v946_v7  ;;  %2721 = vmatpush.msk.msra.mxu1 %vm232_vm1, %v949_v63 }
  0xc8   : > { %2219 = vrot.lane.b32.xlu0 %v2205_v6, %s2860_s4 }
  0xc9   : > { %2213 = vrot.lane.b32.xlu1 %v3104_v1, %s2860_s4 }
  0xca   : > { %v925_v9 = vpop.permute.xlu0 %924 }
  0xcb   : > { %v927_v10 = vpop.permute.xlu1 %926 }
  0xcc   : > { %v944_v12 = vsel %vm942_vm4, %v927_v10, %v3108_v14  ;;  %v943_v15 = vsel %vm942_vm4, %v925_v9, %v927_v10  ;;  %v3199_v20 = vpop.permute.xlu2 %1196  ;;  %2215 = vrot.lane.b32.xlu2 %v3106_v13, %s2860_s4  ;;  %v2746_v14 = vld [vmem:[%s3493_s1 + $0x14] sm:$0xf] }
  0xcd   : > { %2709 = vmatpush.msk.msra.mxu3 %vm232_vm1, %v943_v15  ;;  %2711 = vmatpush.msk.msrb.mxu0 %vm232_vm1, %v944_v12 }
  0xce   : > { %2707 = vmatmul.msk.f32.vlgmr.msra.gmra.mxu2 %vm228_vm2, %v2689_v51  ;;  %2710 = vmatmul.msk.f32.vlgmr.msra.gmra.mxu3 %vm228_vm2, %v2708_v11 }
  0xcf   : > { %2712 = vmatmul.msk.f32.vlgmr.msrb.gmra.mxu0 %vm228_vm2, %v2708_v11  ;;  %2714 = vmatmul.msk.f32.vlgmr.msrb.gmra.mxu1 %vm228_vm2, %v2708_v11 }
  0xd0   : > { %2717 = vmatpush.msk.msrb.mxu3 %vm232_vm1, %v947_v25  ;;  %2719 = vmatpush.msk.msra.mxu0 %vm232_vm1, %v948_v26 }
  0xd1   : > { %2221 = vrot.lane.b32.xlu0 %v2206_v21, %s2860_s4  ;;  %2225 = vrot.lane.b32.xlu1 %v2208_v24, %s2860_s4 }
  0xd2   : > { %v1185_v27 = vpop.permute.xlu0 %1184 }
  0xd3   : > { %v941_v28 = vpop.permute.xlu1 %940  ;;  %v1201_v32 = vsel %vm1198_vm5, %v1185_v27, %v1187_v62 }
  0xd4   : > { %v950_v29 = vsel %vm942_vm4, %v939_v61, %v941_v28  ;;  %2725 = vmatpush.msk.msra.mxu3 %vm232_vm1, %v941_v28  ;;  %v3221_v31 = vpop.permute.xlu2 %1442  ;;  %2227 = vrot.lane.b32.xlu2 %v2209_v35, %s2860_s4 }
  0xd5   : > { %2723 = vmatpush.msk.msra.mxu2 %vm232_vm1, %v950_v29 }
  0xd6   : > { %2716 = vmatmul.msk.f32.vlgmr.msrb.gmra.mxu2 %vm228_vm2, %v2708_v11  ;;  %2718 = vmatmul.msk.f32.vlgmr.msrb.gmra.mxu3 %vm228_vm2, %v2708_v11 }
  0xd7   : > { %2720 = vmatmul.msk.f32.vlgmr.msra.gmra.mxu0 %vm228_vm2, %v2708_v11  ;;  %2722 = vmatmul.msk.f32.vlgmr.msra.gmra.mxu1 %vm228_vm2, %v2708_v11 }
  0xd8   : > { %2732 = vmatpush.msk.msrb.mxu2 %vm232_vm1, %v1201_v32 }
  0xd9   : > { %2223 = vrot.lane.b32.xlu0 %v2207_v33, %s2860_s4  ;;  %2229 = vrot.lane.b32.xlu1 %v2211_v34, %s2860_s4 }
  0xda   : > { %v1183_v36 = vpop.permute.xlu0 %1182 }
  0xdb   : > { %v1189_v37 = vpop.permute.xlu1 %1188  ;;  %v1199_v38 = vsel %vm1198_vm5, %v1181_v5, %v1183_v36  ;;  %v1200_v39 = vsel %vm1198_vm5, %v1183_v36, %v1185_v27 }
  0xdc   : > { %v1202_v40 = vsel %vm1198_vm5, %v1187_v62, %v1189_v37  ;;  %2728 = vmatpush.msk.msrb.mxu0 %vm232_vm1, %v1199_v38  ;;  %2730 = vmatpush.msk.msrb.mxu1 %vm232_vm1, %v1200_v39  ;;  %v1449_v42 = vpop.permute.xlu2 %1448 }
  0xdd   : > { %2734 = vmatpush.msk.msrb.mxu3 %vm232_vm1, %v1202_v40  ;;  %2231 = vrot.lane.b32.xlu2 %v2212_v2, %s2860_s4 }
  0xde   : > { %2724 = vmatmul.msk.f32.vlgmr.msra.gmra.mxu2 %vm228_vm2, %v2708_v11  ;;  %2726 = vmatmul.msk.f32.vlgmr.msra.gmra.mxu3 %vm228_vm2, %v2708_v11 }
  0xdf   : > { %2729 = vmatmul.msk.f32.vlgmr.msrb.gmra.mxu0 %vm228_vm2, %v2727_v41  ;;  %2731 = vmatmul.msk.f32.vlgmr.msrb.gmra.mxu1 %vm228_vm2, %v2727_v41 }
  0xe2   : > { %v1195_v43 = vpop.permute.xlu0 %1194 }
  0xe3   : > { %v1191_v44 = vpop.permute.xlu1 %1190  ;;  %v1205_v45 = vsel %vm1198_vm5, %v3157_v58, %v1195_v43  ;;  %v1206_v46 = vsel %vm1198_vm5, %v1195_v43, %v3199_v20 }
  0xe4   : > { %v1203_v47 = vsel %vm1198_vm5, %v1189_v37, %v1191_v44  ;;  %v1204_v22 = vsel %vm1198_vm5, %v1191_v44, %v3157_v58  ;;  %2740 = vmatpush.msk.msra.mxu2 %vm232_vm1, %v1205_v45  ;;  %2742 = vmatpush.msk.msra.mxu3 %vm232_vm1, %v1206_v46  ;;  %v1694_v48 = vpop.permute.xlu2 %1693 }
  0xe5   : > { %2736 = vmatpush.msk.msra.mxu0 %vm232_vm1, %v1203_v47  ;;  %2738 = vmatpush.msk.msra.mxu1 %vm232_vm1, %v1204_v22 }
  0xe6   : > { %2733 = vmatmul.msk.f32.vlgmr.msrb.gmra.mxu2 %vm228_vm2, %v2727_v41  ;;  %2735 = vmatmul.msk.f32.vlgmr.msrb.gmra.mxu3 %vm228_vm2, %v2727_v41 }
  0xe7   : > { %2737 = vmatmul.msk.f32.vlgmr.msra.gmra.mxu0 %vm228_vm2, %v2727_v41  ;;  %2739 = vmatmul.msk.f32.vlgmr.msra.gmra.mxu1 %vm228_vm2, %v2727_v41 }
  0xe8   : > { %2744 = vmatpush.msk.msrb.mxu0 %vm232_vm1, %v3199_v20 }
  0xea   : > { %v1439_v49 = vpop.permute.xlu0 %1438 }
  0xeb   : > { %v1441_v3 = vpop.permute.xlu1 %1440 }
  0xec   : > { %v1457_v50 = vsel %vm1454_vm6, %v1441_v3, %v3221_v31  ;;  %v1456_v0 = vsel %vm1454_vm6, %v1439_v49, %v1441_v3  ;;  %v1698_v1 = vpop.permute.xlu2 %1697 }
  0xed   : > { %2749 = vmatpush.msk.msrb.mxu2 %vm232_vm1, %v1456_v0  ;;  %2751 = vmatpush.msk.msrb.mxu3 %vm232_vm1, %v1457_v50 }
  0xee   : > { %2741 = vmatmul.msk.f32.vlgmr.msra.gmra.mxu2 %vm228_vm2, %v2727_v41  ;;  %2743 = vmatmul.msk.f32.vlgmr.msra.gmra.mxu3 %vm228_vm2, %v2727_v41 }
  0xef   : > { %2745 = vmatmul.msk.f32.vlgmr.msrb.gmra.mxu0 %vm228_vm2, %v2727_v41 }
  0xf2   : > { %v1437_v13 = vpop.permute.xlu0 %1436 }
  0xf3   : > { %v1447_v16 = vpop.permute.xlu1 %1446  ;;  %v1455_v17 = vsel %vm1454_vm6, %v1437_v13, %v1439_v49 }
  0xf4   : > { %v1460_v18 = vsel %vm1454_vm6, %v1447_v16, %v1449_v42  ;;  %2747 = vmatpush.msk.msrb.mxu1 %vm232_vm1, %v1455_v17  ;;  %v1700_v4 = vpop.permute.xlu2 %1699 }
  0xf5   : > { %2757 = vmatpush.msk.msra.mxu2 %vm232_vm1, %v1460_v18  ;;  %2748 = vmatmul.msk.f32.vlgmr.msrb.gmra.mxu1 %vm228_vm2, %v2746_v14  ;;  %v1716_v60 = vsel %vm1713_vm7, %v1698_v1, %v1700_v4 }
  0xf6   : > { %2750 = vmatmul.msk.f32.vlgmr.msrb.gmra.mxu2 %vm228_vm2, %v2746_v14  ;;  %2752 = vmatmul.msk.f32.vlgmr.msrb.gmra.mxu3 %vm228_vm2, %v2746_v14 }
  0xfa   : > { %v1445_v19 = vpop.permute.xlu0 %1444 }
  0xfb   : > { %v1451_v23 = vpop.permute.xlu1 %1450  ;;  %v1458_v30 = vsel %vm1454_vm6, %v3221_v31, %v1445_v19  ;;  %v1459_v51 = vsel %vm1454_vm6, %v1445_v19, %v1447_v16  ;;  %v2784_v31 = vld [vmem:[%s3493_s1 + $0x1c] sm:$0xf] }
  0xfc   : > { %v1461_v52 = vsel %vm1454_vm6, %v1449_v42, %v1451_v23  ;;  %2753 = vmatpush.msk.msra.mxu0 %vm232_vm1, %v1458_v30  ;;  %2755 = vmatpush.msk.msra.mxu1 %vm232_vm1, %v1459_v51 }
  0xfd   : > { %2759 = vmatpush.msk.msra.mxu3 %vm232_vm1, %v1461_v52  ;;  %2754 = vmatmul.msk.f32.vlgmr.msra.gmra.mxu0 %vm228_vm2, %v2746_v14 }
  0xfe   : > { %2756 = vmatmul.msk.f32.vlgmr.msra.gmra.mxu1 %vm228_vm2, %v2746_v14  ;;  %2758 = vmatmul.msk.f32.vlgmr.msra.gmra.mxu2 %vm228_vm2, %v2746_v14  ;;  %v1712_v53 = vpop.permute.xlu2 %1711 }
  0xff   : > { %2760 = vmatmul.msk.f32.vlgmr.msra.gmra.mxu3 %vm228_vm2, %v2746_v14 }
 0x102   : > { %v1696_v54 = vpop.permute.xlu0 %1695 }
 0x103   : > { %v1453_v55 = vpop.permute.xlu1 %1452  ;;  %v1714_v56 = vsel %vm1713_vm7, %v1694_v48, %v1696_v54  ;;  %v1715_v57 = vsel %vm1713_vm7, %v1696_v54, %v1698_v1 }
 0x104   : > { %v1462_v58 = vsel %vm1454_vm6, %v1451_v23, %v1453_v55  ;;  %2763 = vmatpush.msk.msrb.mxu1 %vm232_vm1, %v1453_v55  ;;  %2766 = vmatpush.msk.msrb.mxu2 %vm232_vm1, %v1714_v56 }
 0x105   : > { %2761 = vmatpush.msk.msrb.mxu0 %vm232_vm1, %v1462_v58  ;;  %2768 = vmatpush.msk.msrb.mxu3 %vm232_vm1, %v1715_v57 }
 0x106   : > { %2762 = vmatmul.msk.f32.vlgmr.msrb.gmra.mxu0 %vm228_vm2, %v2746_v14  ;;  %2764 = vmatmul.msk.f32.vlgmr.msrb.gmra.mxu1 %vm228_vm2, %v2746_v14  ;;  %v1956_v61 = vpop.permute.xlu2 %1955 }
 0x107   : > { %2767 = vmatmul.msk.f32.vlgmr.msrb.gmra.mxu2 %vm228_vm2, %v2765_v59  ;;  %2769 = vmatmul.msk.f32.vlgmr.msrb.gmra.mxu3 %vm228_vm2, %v2765_v59 }
 0x108   : > { %2770 = vmatpush.msk.msra.mxu0 %vm232_vm1, %v1716_v60 }
 0x10a   : > { %v1702_v62 = vpop.permute.xlu0 %1701 }
 0x10b   : > { %v1704_v63 = vpop.permute.xlu1 %1703  ;;  %v1717_v5 = vsel %vm1713_vm7, %v1700_v4, %v1702_v62 }
 0x10c   : > { %v1718_v6 = vsel %vm1713_vm7, %v1702_v62, %v1704_v63  ;;  %2772 = vmatpush.msk.msra.mxu1 %vm232_vm1, %v1717_v5 }
 0x10d   : > { %2774 = vmatpush.msk.msra.mxu2 %vm232_vm1, %v1718_v6 }
 0x10e   : > { %2771 = vmatmul.msk.f32.vlgmr.msra.gmra.mxu0 %vm228_vm2, %v2765_v59  ;;  %2773 = vmatmul.msk.f32.vlgmr.msra.gmra.mxu1 %vm228_vm2, %v2765_v59  ;;  %v1958_v8 = vpop.permute.xlu2 %1957 }
 0x10f   : > { %2775 = vmatmul.msk.f32.vlgmr.msra.gmra.mxu2 %vm228_vm2, %v2765_v59  ;;  %v1975_v28 = vsel %vm1973_vm8, %v1956_v61, %v1958_v8 }
 0x112   : > { %v1706_v7 = vpop.permute.xlu0 %1705 }
 0x113   : > { %v268_v9 = vpop.f32.mrf.mxu0  ;;  %v288_v10 = vpop.f32.mrf.mxu1  ;;  %v1719_v11 = vsel %vm1713_vm7, %v1704_v63, %v1706_v7 }
 0x114   : > { %v1710_v12 = vpop.permute.xlu1 %1709  ;;  %2776 = vmatpush.msk.msra.mxu3 %vm232_vm1, %v1719_v11 }
 0x115   : > { %v1722_v15 = vsel %vm1713_vm7, %v1710_v12, %v1712_v53  ;;  %2777 = vmatmul.msk.f32.vlgmr.msra.gmra.mxu3 %vm228_vm2, %v2765_v59 }
 0x116   : > { %2782 = vmatpush.msk.msrb.mxu2 %vm232_vm1, %v1722_v15  ;;  %v1970_v34 = vpop.permute.xlu2 %1969 }
 0x117   : > { %2783 = vmatmul.msk.f32.vlgmr.msrb.gmra.mxu2 %vm228_vm2, %v2765_v59 }
 0x11a   : > { %v1708_v20 = vpop.permute.xlu0 %1707  ;;  %v328_v21 = vpop.f32.mrf.mxu3 }
 0x11b   : > { %v348_v24 = vpop.f32.mrf.mxu0  ;;  %v3322_v25 = vpop.f32.mrf.mxu1  ;;  %v1720_v26 = vsel %vm1713_vm7, %v1706_v7, %v1708_v20  ;;  %v1721_v27 = vsel %vm1713_vm7, %v1708_v20, %v1710_v12 }
 0x11c   : > { %v1954_v29 = vpop.permute.xlu1 %1953  ;;  %2778 = vmatpush.msk.msrb.mxu0 %vm232_vm1, %v1720_v26  ;;  %2780 = vmatpush.msk.msrb.mxu1 %vm232_vm1, %v1721_v27  ;;  %v308_v32 = vpop.f32.mrf.mxu2 }
 0x11d   : > { %v1974_v33 = vsel %vm1973_vm8, %v1954_v29, %v1956_v61  ;;  %2779 = vmatmul.msk.f32.vlgmr.msrb.gmra.mxu0 %vm228_vm2, %v2765_v59  ;;  %2781 = vmatmul.msk.f32.vlgmr.msrb.gmra.mxu1 %vm228_vm2, %v2765_v59  ;;  %v2803_v59 = vld [vmem:[%s3493_s1 + $0x20] sm:$0xf] }
 0x11e   : > { %2785 = vmatpush.msk.msrb.mxu3 %vm232_vm1, %v1974_v33  ;;  %2787 = vmatpush.msk.msra.mxu0 %vm232_vm1, %v1975_v28  ;;  %v2218_v43 = vpop.permute.xlu2 %2217 }
 0x11f   : > { %2786 = vmatmul.msk.f32.vlgmr.msrb.gmra.mxu3 %vm228_vm2, %v2784_v31 }
 0x122   : > { %v1960_v35 = vpop.permute.xlu0 %1959  ;;  %v408_v36 = vpop.f32.mrf.mxu3 }
 0x123   : > { %v428_v37 = vpop.f32.mrf.mxu0  ;;  %v486_v38 = vpop.f32.mrf.mxu1  ;;  %v1976_v39 = vsel %vm1973_vm8, %v1958_v8, %v1960_v35 }
 0x124   : > { %v3339_v40 = vadd.f32 %v486_v38, %v268_v9  ;;  %v1962_v41 = vpop.permute.xlu1 %1961  ;;  %2789 = vmatpush.msk.msra.mxu1 %vm232_vm1, %v1976_v39  ;;  %v388_v42 = vpop.f32.mrf.mxu2 }
 0x125   : > { %v1977_v2 = vsel %vm1973_vm8, %v1960_v35, %v1962_v41  ;;  %2788 = vmatmul.msk.f32.vlgmr.msra.gmra.mxu0 %vm228_vm2, %v2784_v31  ;;  %2790 = vmatmul.msk.f32.vlgmr.msra.gmra.mxu1 %vm228_vm2, %v2784_v31 }
 0x126   : > { %2791 = vmatpush.msk.msra.mxu2 %vm232_vm1, %v1977_v2  ;;  %v2216_v14 = vpop.permute.xlu2 %2215 }
 0x127   : > { %2792 = vmatmul.msk.f32.vlgmr.msra.gmra.mxu2 %vm228_vm2, %v2784_v31  ;;  %v2235_v23 = vsel %vm2233_vm9, %v2216_v14, %v2218_v43 }
 0x12a   : > { %v1964_v44 = vpop.permute.xlu0 %1963  ;;  %v526_v45 = vpop.f32.mrf.mxu3 }
 0x12b   : > { %v546_v46 = vpop.f32.mrf.mxu0  ;;  %v566_v47 = vpop.f32.mrf.mxu1  ;;  %v1978_v22 = vsel %vm1973_vm8, %v1962_v41, %v1964_v44  ;;  %v527_v48 = vadd.f32 %v526_v45, %v308_v32 }
 0x12c   : > { %v547_v49 = vadd.f32 %v546_v46, %v328_v21  ;;  %v3348_v3 = vadd.f32 %v566_v47, %v348_v24  ;;  %v1968_v50 = vpop.permute.xlu1 %1967  ;;  %2793 = vmatpush.msk.msra.mxu3 %vm232_vm1, %v1978_v22  ;;  %v506_v0 = vpop.f32.mrf.mxu2 }
 0x12d   : > { %v1981_v1 = vsel %vm1973_vm8, %v1968_v50, %v1970_v34  ;;  %2794 = vmatmul.msk.f32.vlgmr.msra.gmra.mxu3 %vm228_vm2, %v2784_v31  ;;  %v507_v13 = vadd.f32 %v506_v0, %v288_v10 }
 0x12e   : > { %2799 = vmatpush.msk.msrb.mxu2 %vm232_vm1, %v1981_v1  ;;  %v2228_v11 = vpop.permute.xlu2 %2227 }
 0x12f   : > { %2800 = vmatmul.msk.f32.vlgmr.msrb.gmra.mxu2 %vm228_vm2, %v2784_v31 }
 0x132   : > { %v1966_v16 = vpop.permute.xlu0 %1965 }
 0x133   : > { %v626_v17 = vpop.f32.mrf.mxu0  ;;  %v1979_v18 = vsel %vm1973_vm8, %v1964_v44, %v1966_v16  ;;  %v1980_v4 = vsel %vm1973_vm8, %v1966_v16, %v1968_v50  ;;  %v646_v19 = vpop.f32.mrf.mxu1 }
 0x134   : > { %v627_v30 = vadd.f32 %v626_v17, %v408_v36  ;;  %v1972_v51 = vpop.permute.xlu1 %1971  ;;  %v3358_v52 = vadd.f32 %v646_v19, %v428_v37  ;;  %2795 = vmatpush.msk.msrb.mxu0 %vm232_vm1, %v1979_v18  ;;  %2797 = vmatpush.msk.msrb.mxu1 %vm232_vm1, %v1980_v4  ;;  %v606_v53 = vpop.f32.mrf.mxu3 }
 0x135   : > { %v1982_v54 = vsel %vm1973_vm8, %v1970_v34, %v1972_v51  ;;  %v607_v55 = vadd.f32 %v606_v53, %v388_v42  ;;  %2796 = vmatmul.msk.f32.vlgmr.msrb.gmra.mxu0 %vm228_vm2, %v2784_v31  ;;  %2798 = vmatmul.msk.f32.vlgmr.msrb.gmra.mxu1 %vm228_vm2, %v2784_v31  ;;  %v586_v56 = vpop.f32.mrf.mxu2 }
 0x136   : > { %2801 = vmatpush.msk.msrb.mxu3 %vm232_vm1, %v1982_v54  ;;  %v587_v57 = vadd.f32 %v586_v56, %v3322_v25  ;;  %2806 = vmatpush.msk.msra.mxu1 %vm232_vm1, %v2235_v23 }
 0x137   : > { %2802 = vmatmul.msk.f32.vlgmr.msrb.gmra.mxu3 %vm228_vm2, %v2784_v31  ;;  %v2232_v34 = vpop.permute.xlu2 %2231 }
 0x13a   : > { %v2220_v58 = vpop.permute.xlu0 %2219 }
 0x13b   : > { %v773_v60 = vpop.f32.mrf.mxu0  ;;  %v2236_v61 = vsel %vm2233_vm9, %v2218_v43, %v2220_v58  ;;  %v793_v62 = vpop.f32.mrf.mxu1 }
 0x13c   : > { %v898_v63 = vadd.f32 %v773_v60, %v527_v48  ;;  %v2214_v5 = vpop.permute.xlu1 %2213  ;;  %v899_v6 = vadd.f32 %v793_v62, %v547_v49  ;;  %2808 = vmatpush.msk.msra.mxu2 %vm232_vm1, %v2236_v61  ;;  %v753_v7 = vpop.f32.mrf.mxu3 }
 0x13d   : > { %v2234_v8 = vsel %vm2233_vm9, %v2214_v5, %v2216_v14  ;;  %v897_v9 = vadd.f32 %v753_v7, %v507_v13  ;;  %2807 = vmatmul.msk.f32.vlgmr.msra.gmra.mxu1 %vm228_vm2, %v2803_v59  ;;  %2809 = vmatmul.msk.f32.vlgmr.msra.gmra.mxu2 %vm228_vm2, %v2803_v59 }
 0x13e   : > { %2804 = vmatpush.msk.msra.mxu0 %vm232_vm1, %v2234_v8 }
 0x13f   : > { %2805 = vmatmul.msk.f32.vlgmr.msra.gmra.mxu0 %vm228_vm2, %v2803_v59 }
 0x140   : > { %v733_v10 = vpop.f32.mrf.mxu2 }
 0x141   : > { %v896_v12 = vadd.f32 %v733_v10, %v3339_v40 }
 0x143   : > { %v853_v15 = vpop.f32.mrf.mxu0  ;;  %v2222_v20 = vpop.permute.xlu0 %2221 }
 0x144   : > { %v902_v21 = vadd.f32 %v853_v15, %v607_v55  ;;  %v2237_v24 = vsel %vm2233_vm9, %v2220_v58, %v2222_v20  ;;  %v2226_v25 = vpop.permute.xlu1 %2225  ;;  %v873_v26 = vpop.f32.mrf.mxu1 }
 0x145   : > { %v2240_v27 = vsel %vm2233_vm9, %v2226_v25, %v2228_v11  ;;  %v903_v28 = vadd.f32 %v873_v26, %v627_v30  ;;  %2810 = vmatpush.msk.msra.mxu3 %vm232_vm1, %v2237_v24  ;;  %v833_v29 = vpop.f32.mrf.mxu3 }
 0x146   : > { %2816 = vmatpush.msk.msrb.mxu2 %vm232_vm1, %v2240_v27  ;;  %v901_v31 = vadd.f32 %v833_v29, %v587_v57  ;;  %2811 = vmatmul.msk.f32.vlgmr.msra.gmra.mxu3 %vm228_vm2, %v2803_v59 }
 0x147   : > { %2817 = vmatmul.msk.f32.vlgmr.msrb.gmra.mxu2 %vm228_vm2, %v2803_v59 }
 0x148   : > { %v813_v32 = vpop.f32.mrf.mxu2 }
 0x149   : > { %v900_v33 = vadd.f32 %v813_v32, %v3348_v3 }
 0x14b   : > { %v2224_v35 = vpop.permute.xlu0 %2223 }
 0x14c   : > { %v1009_v36 = vpop.f32.mrf.mxu0  ;;  %v2238_v37 = vsel %vm2233_vm9, %v2222_v20, %v2224_v35  ;;  %v2239_v38 = vsel %vm2233_vm9, %v2224_v35, %v2226_v25  ;;  %v2230_v39 = vpop.permute.xlu1 %2229 }
 0x14d   : > { %v1153_v40 = vadd.f32 %v1009_v36, %v897_v9  ;;  %v2241_v41 = vsel %vm2233_vm9, %v2228_v11, %v2230_v39  ;;  %v2242_v42 = vsel %vm2233_vm9, %v2230_v39, %v2232_v34  ;;  %v1029_v2 = vpop.f32.mrf.mxu1  ;;  %2812 = vmatpush.msk.msrb.mxu0 %vm232_vm1, %v2238_v37  ;;  %2814 = vmatpush.msk.msrb.mxu1 %vm232_vm1, %v2239_v38 }
 0x14e   : > { %v1154_v43 = vadd.f32 %v1029_v2, %v898_v63  ;;  %2818 = vmatpush.msk.msrb.mxu3 %vm232_vm1, %v2241_v41  ;;  %2813 = vmatmul.msk.f32.vlgmr.msrb.gmra.mxu0 %vm228_vm2, %v2803_v59 }
 0x14f   : > { %2815 = vmatmul.msk.f32.vlgmr.msrb.gmra.mxu1 %vm228_vm2, %v2803_v59  ;;  %2819 = vmatmul.msk.f32.vlgmr.msrb.gmra.mxu3 %vm228_vm2, %v2803_v59 }
 0x150   : > { %2820 = vmatpush.msk.msra.mxu0 %vm232_vm1, %v2242_v42 }
 0x151   : > { %v893_v44 = vpop.f32.mrf.mxu2  ;;  %v989_v45 = vpop.f32.mrf.mxu3 }
 0x152   : > { %v904_v46 = vadd.f32 %v893_v44, %v3358_v52  ;;  %v1152_v47 = vadd.f32 %v989_v45, %v896_v12  ;;  %v3415_v45 = vld [vmem:[%s3494_s2] sm:$0xff] }
 0x154   : > { %v1089_v22 = vpop.f32.mrf.mxu0 }
 0x155   : > { %v1157_v48 = vadd.f32 %v1089_v22, %v901_v31  ;;  %v1109_v49 = vpop.f32.mrf.mxu1 }
 0x156   : > { %v1158_v3 = vadd.f32 %v1109_v49, %v902_v21  ;;  %2821 = vmatmul.msk.f32.vlgmr.msra.gmra.mxu0 %vm228_vm2, %v2803_v59 }
 0x159   : > { %v1049_v50 = vpop.f32.mrf.mxu2  ;;  %v1069_v0 = vpop.f32.mrf.mxu3 }
 0x15a   : > { %v1155_v1 = vadd.f32 %v1049_v50, %v899_v6  ;;  %v1156_v13 = vadd.f32 %v1069_v0, %v900_v33  ;;  %v2457_v50 = vperm.slane %v3415_v45, 0 }
 0x15c   : > { %v1245_v14 = vpop.f32.mrf.mxu0 }
 0x15d   : > { %v1408_v16 = vadd.f32 %v1245_v14, %v1152_v47  ;;  %v1265_v17 = vpop.f32.mrf.mxu1 }
 0x15e   : > { %v1409_v18 = vadd.f32 %v1265_v17, %v1153_v40 }
 0x161   : > { %v1129_v4 = vpop.f32.mrf.mxu2  ;;  %v1149_v19 = vpop.f32.mrf.mxu3 }
 0x162   : > { %v1159_v23 = vadd.f32 %v1129_v4, %v903_v28  ;;  %v1160_v30 = vadd.f32 %v1149_v19, %v904_v46 }
 0x164   : > { %v1325_v51 = vpop.f32.mrf.mxu0 }
 0x165   : > { %v3400_v52 = vadd.f32 %v1325_v51, %v1156_v13  ;;  %v1345_v53 = vpop.f32.mrf.mxu1 }
 0x166   : > { %v1413_v54 = vadd.f32 %v1345_v53, %v1157_v48 }
 0x169   : > { %v1285_v55 = vpop.f32.mrf.mxu2  ;;  %v1305_v56 = vpop.f32.mrf.mxu3 }
 0x16a   : > { %v1410_v57 = vadd.f32 %v1285_v55, %v1154_v43  ;;  %v1411_v58 = vadd.f32 %v1305_v56, %v1155_v1  ;;  %v2458_v1 = vperm.slane %v3415_v45, 1 }
 0x16c   : > { %v1405_v59 = vpop.f32.mrf.mxu0 }
 0x16d   : > { %v3402_v60 = vadd.f32 %v1405_v59, %v1160_v30 }
 0x171   : > { %v1365_v61 = vpop.f32.mrf.mxu2  ;;  %v1385_v62 = vpop.f32.mrf.mxu3 }
 0x172   : > { %v1414_v63 = vadd.f32 %v1365_v61, %v1158_v3  ;;  %v1415_v5 = vadd.f32 %v1385_v62, %v1159_v23  ;;  %v1501_v6 = vpop.f32.mrf.mxu1 }
 0x173   : > { %v1664_v40 = vadd.f32 %v1501_v6, %v1408_v16  ;;  %v2459_v16 = vperm.slane %v3415_v45, 2 }
 0x179   : > { %v1521_v7 = vpop.f32.mrf.mxu2  ;;  %v1541_v11 = vpop.f32.mrf.mxu3 }
 0x17a   : > { %v1561_v8 = vpop.f32.mrf.mxu0  ;;  %v1665_v41 = vadd.f32 %v1521_v7, %v1409_v18  ;;  %v1666_v44 = vadd.f32 %v1541_v11, %v1410_v57  ;;  %v2460_v11 = vperm.slane %v3415_v45, 3 }
 0x17b   : > { %v1581_v9 = vpop.f32.mrf.mxu1  ;;  %v1667_v23 = vadd.f32 %v1561_v8, %v1411_v58 }
 0x17c   : > { %v1668_v51 = vadd.f32 %v1581_v9, %v3400_v52 }
 0x181   : > { %v1601_v10 = vpop.f32.mrf.mxu2 }
 0x182   : > { %v1621_v21 = vpop.f32.mrf.mxu3  ;;  %v1669_v53 = vadd.f32 %v1601_v10, %v1413_v54  ;;  %v2463_v54 = vperm.slane %v3415_v45, 6 }
 0x183   : > { %v1641_v12 = vpop.f32.mrf.mxu0  ;;  %v3404_v15 = vpop.f32.mrf.mxu1  ;;  %v1670_v55 = vadd.f32 %v1621_v21, %v1414_v63  ;;  %v2461_v63 = vperm.slane %v3415_v45, 4 }
 0x184   : > { %v1671_v56 = vadd.f32 %v1641_v12, %v1415_v5 }
 0x18a   : > { %v1761_v20 = vpop.f32.mrf.mxu2  ;;  %v1781_v27 = vpop.f32.mrf.mxu3 }
 0x18b   : > { %v1801_v24 = vpop.f32.mrf.mxu0  ;;  %v1821_v25 = vpop.f32.mrf.mxu1  ;;  %v1924_v2 = vadd.f32 %v1761_v20, %v1664_v40  ;;  %v1925_v43 = vadd.f32 %v1781_v27, %v1665_v41 }
 0x18c   : > { %v1926_v49 = vadd.f32 %v1801_v24, %v1666_v44  ;;  %v1927_v57 = vadd.f32 %v1821_v25, %v1667_v23 }
 0x192   : > { %v1841_v26 = vpop.f32.mrf.mxu2 }
 0x193   : > { %v1928_v62 = vadd.f32 %v1841_v26, %v1668_v51 }
 0x198   : > { %v1861_v31 = vpop.f32.mrf.mxu3 }
 0x199   : > { %v1929_v6 = vadd.f32 %v1861_v31, %v1669_v53 }
 0x19a   : > { %v1881_v28 = vpop.f32.mrf.mxu0  ;;  %v3406_v29 = vpop.f32.mrf.mxu1 }
 0x19b   : > { %v3408_v32 = vpop.f32.mrf.mxu2  ;;  %v1930_v7 = vadd.f32 %v1881_v28, %v1670_v55  ;;  %v1931_v41 = vadd.f32 %v3406_v29, %v1671_v56 }
 0x1a2   : > { %v2041_v33 = vpop.f32.mrf.mxu0  ;;  %v2061_v34 = vpop.f32.mrf.mxu1 }
 0x1a3   : > { %v2021_v36 = vpop.f32.mrf.mxu3  ;;  %v2185_v22 = vadd.f32 %v2041_v33, %v1925_v43  ;;  %v2186_v13 = vadd.f32 %v2061_v34, %v1926_v49  ;;  %v2462_v34 = vperm.slane %v3415_v45, 5 }
 0x1a4   : > { %v2184_v47 = vadd.f32 %v2021_v36, %v1924_v2 }
 0x1aa   : > { %v2081_v35 = vpop.f32.mrf.mxu2 }
 0x1ab   : > { %v2187_v20 = vadd.f32 %v2081_v35, %v1927_v57  ;;  %v1672_v35 = vadd.f32 %v3404_v15, %v3402_v60 }
 0x1ad   : > { %v1932_v15 = vadd.f32 %v3408_v32, %v1672_v35 }
 0x1b0   : > { %v2101_v39 = vpop.f32.mrf.mxu3 }
 0x1b1   : > { %v2188_v27 = vadd.f32 %v2101_v39, %v1928_v62 }
 0x1b2   : > { %v2121_v37 = vpop.f32.mrf.mxu0  ;;  %v2141_v38 = vpop.f32.mrf.mxu1 }
 0x1b3   : > { %v3410_v42 = vpop.f32.mrf.mxu2  ;;  %v2190_v33 = vadd.f32 %v2141_v38, %v1930_v7  ;;  %v2189_v25 = vadd.f32 %v2121_v37, %v1929_v6 }
 0x1ba   : > { %v2301_v46 = vpop.f32.mrf.mxu1  ;;  %v2181_v17 = vpop.f32.mrf.mxu3 }
 0x1bb   : > { %v3420_v0 = vadd.f32 %v2301_v46, %v2185_v22  ;;  %v2192_v23 = vadd.f32 %v2181_v17, %v1932_v15 }
 0x1bc   : > { %v2281_v48 = vpop.f32.mrf.mxu0 }
 0x1bd   : > { %v3417_v3 = vadd.f32 %v2281_v48, %v2184_v47  ;;  %v2476_v19 = vmul.f32 %v2458_v1, %v3420_v0 }
 0x1bf   : > { %v2475_v4 = vmul.f32 %v2457_v50, %v3417_v3  ;;  %v2505_v61 = vmul.f32 %v2476_v19, %v2476_v19  ;;  %v2485_v58 = vsel %vm232_vm1, %v2476_v19, 0.0  ;;  %v2191_v50 = vadd.f32 %v3410_v42, %v1931_v41  ;;  %v2842_v42 = vld [vmem:[%s3494_s2 + $0x8] ss:$0 sm:$0xff] }
 0x1c0   : > { %v2321_v14 = vpop.f32.mrf.mxu2  ;;  %v2464_v19 = vperm.slane %v3415_v45, 7 }
 0x1c1   : > { %v3424_v18 = vadd.f32 %v2321_v14, %v2186_v13  ;;  %v2504_v59 = vmul.f32 %v2475_v4, %v2475_v4  ;;  %v2484_v24 = vsel %vm232_vm1, %v2475_v4, 0.0  ;;  %v2514_v9 = vsel %vm232_vm1, %v2505_v61, 0.0 }
 0x1c2   : > { %v2486_v26 = vadd.f32 %v2485_v58, %v2484_v24 }
 0x1c3   : > { %v2477_v30 = vmul.f32 %v2459_v16, %v3424_v18  ;;  %v2513_v5 = vsel %vm232_vm1, %v2504_v59, 0.0 }
 0x1c4   : > { %v2515_v2 = vadd.f32 %v2514_v9, %v2513_v5 }
 0x1c5   : > { %v2506_v8 = vmul.f32 %v2477_v30, %v2477_v30  ;;  %v2487_v10 = vsel %vm232_vm1, %v2477_v30, 0.0 }
 0x1c6   : > { %v2488_v37 = vadd.f32 %v2487_v10, %v2486_v26 }
 0x1c7   : > { %v2516_v36 = vsel %vm232_vm1, %v2506_v8, 0.0 }
 0x1c8   : > { %v2517_v22 = vadd.f32 %v2516_v36, %v2515_v2 }
 0x1c9   : > { %v2341_v52 = vpop.f32.mrf.mxu3 }
 0x1ca   : > { %v3438_v12 = vadd.f32 %v2341_v52, %v2187_v20  ;;  %v2401_v21 = vpop.f32.mrf.mxu2 }
 0x1cb   : > { %v3440_v28 = vadd.f32 %v2401_v21, %v2190_v33  ;;  %v2361_v31 = vpop.f32.mrf.mxu0 }
 0x1cc   : > { %v2478_v38 = vmul.f32 %v2460_v11, %v3438_v12  ;;  %v3447_v39 = vadd.f32 %v2361_v31, %v2188_v27  ;;  %v2381_v40 = vpop.f32.mrf.mxu1 }
 0x1cd   : > { %v3450_v43 = vadd.f32 %v2381_v40, %v2189_v25  ;;  %v2481_v47 = vmul.f32 %v2463_v54, %v3440_v28 }
 0x1ce   : > { %v2489_v44 = vsel %vm232_vm1, %v2478_v38, 0.0  ;;  %v2507_v46 = vmul.f32 %v2478_v38, %v2478_v38  ;;  %v2479_v60 = vmul.f32 %v2461_v63, %v3447_v39 }
 0x1cf   : > { %v2490_v48 = vadd.f32 %v2489_v44, %v2488_v37  ;;  %v2480_v49 = vmul.f32 %v2462_v34, %v3450_v43  ;;  %v2510_v30 = vmul.f32 %v2481_v47, %v2481_v47  ;;  %v2495_v61 = vsel %vm232_vm1, %v2481_v47, 0.0 }
 0x1d0   : > { %v2518_v29 = vsel %vm232_vm1, %v2507_v46, 0.0  ;;  %v2491_v1 = vsel %vm232_vm1, %v2479_v60, 0.0  ;;  %v2508_v13 = vmul.f32 %v2479_v60, %v2479_v60 }
 0x1d1   : > { %v2519_v14 = vadd.f32 %v2518_v29, %v2517_v22  ;;  %v2492_v16 = vadd.f32 %v2491_v1, %v2490_v48  ;;  %v2509_v4 = vmul.f32 %v2480_v49, %v2480_v49  ;;  %v2493_v51 = vsel %vm232_vm1, %v2480_v49, 0.0 }
 0x1d2   : > { %v2520_v32 = vsel %vm232_vm1, %v2508_v13, 0.0  ;;  %v2421_v53 = vpop.f32.mrf.mxu3  ;;  %v2524_v20 = vsel %vm232_vm1, %v2510_v30, 0.0 }
 0x1d3   : > { %v2521_v55 = vadd.f32 %v2520_v32, %v2519_v14  ;;  %v2494_v56 = vadd.f32 %v2493_v51, %v2492_v16  ;;  %v2451_v57 = vadd.f32 %v2421_v53, %v2191_v50  ;;  %v2441_v59 = vpop.f32.mrf.mxu0  ;;  %v2522_v62 = vsel %vm232_vm1, %v2509_v4, 0.0 }
 0x1d4   : > { %v2452_v45 = vadd.f32 %v2441_v59, %v2192_v23 }
 0x1d5   : > { %v2482_v17 = vmul.f32 %v2464_v19, %v2451_v57  ;;  %v2496_v6 = vadd.f32 %v2495_v61, %v2494_v56  ;;  %v2523_v7 = vadd.f32 %v2522_v62, %v2521_v55 }
 0x1d6   : > { %v2483_v11 = vmul.f32 %v2842_v42, %v2452_v45 }
 0x1d7   : > { %v2511_v24 = vmul.f32 %v2482_v17, %v2482_v17  ;;  %v2497_v58 = vsel %vm232_vm1, %v2482_v17, 0.0  ;;  %v2525_v8 = vadd.f32 %v2524_v20, %v2523_v7 }
 0x1d8   : > { %v2498_v27 = vadd.f32 %v2497_v58, %v2496_v6  ;;  %v2500_v33 = vsel %vm2499_vm10, %v2483_v11, 0.0  ;;  %v2512_v52 = vmul.f32 %v2483_v11, %v2483_v11 }
 0x1d9   : > { %v2526_v54 = vsel %vm232_vm1, %v2511_v24, 0.0 }
 0x1da   : > { %v2501_v63 = vadd.f32 %v2500_v33, %v2498_v27  ;;  %v2527_v5 = vadd.f32 %v2526_v54, %v2525_v8  ;;  %v2528_v9 = vsel %vm2499_vm10, %v2512_v52, 0.0 }
 0x1dc   : > { %2502 = vadd.xlane.f32.xlu0 %v2501_v63  ;;  %v2529_v10 = vadd.f32 %v2528_v9, %v2527_v5 }
 0x1de   : > { %2530 = vadd.xlane.f32.xlu1 %v2529_v10 }
 0x24f   : > { %v2503_v21 = vpop.xlane.xlu0 %2502 }
 0x250   : > { %v2532_v25 = vmul.f32 0.0009765625, %v2503_v21 }
 0x251   : > { %v2531_v26 = vpop.xlane.xlu1 %2530 }
 0x252   : > { %v2533_v31 = vmul.f32 0.0009765625, %v2531_v26  ;;  %v2534_v34 = vmul.f32 %v2532_v25, %v2532_v25  ;;  %v2536_v46 = vsub.f32 %v3417_v3, %v2532_v25  ;;  %v2537_v47 = vsub.f32 %v3420_v0, %v2532_v25 }
 0x253   : > { %v2539_v60 = vsub.f32 %v3438_v12, %v2532_v25  ;;  %v2538_v15 = vsub.f32 %v3424_v18, %v2532_v25  ;;  %v2541_v22 = vsub.f32 %v3450_v43, %v2532_v25  ;;  %v2543_v48 = vsub.f32 %v2451_v57, %v2532_v25 }
 0x254   : > { %v2535_v35 = vsub.f32 %v2533_v31, %v2534_v34  ;;  %v2540_v50 = vsub.f32 %v3447_v39, %v2532_v25  ;;  %v2544_v29 = vsub.f32 %v2452_v45, %v2532_v25  ;;  %v2542_v3 = vsub.f32 %v3440_v28, %v2532_v25 }
 0x256   : > { %v2545_v36 = vadd.f32 1e-05, %v2535_v35 }
 0x258   : > { %2843 = vrsqrt.f32 %v2545_v36  ;;  %vm2552_vm12 = vweird.f32 %v2545_v36 }
 0x25e   : > { %v2844_v38 = vpop.eup %2843 }
 0x25f   : > { %v2547_v40 = vmul.f32 %v2844_v38, %v2545_v36  ;;  %vm2553_vm11 = vweird.f32 %v2844_v38 }
 0x260   : > { %vm2554_vm13 = vmor %vm2552_vm12, %vm2553_vm11 }
 0x261   : > { %v2548_v41 = vmul.f32 %v2844_v38, %v2547_v40 }
 0x263   : > { %v2549_v2 = vmul.f32 0.5, %v2548_v41 }
 0x265   : > { %v2550_v37 = vsub.f32 1.5, %v2549_v2 }
 0x267   : > { %v2551_v44 = vmul.f32 %v2844_v38, %v2550_v37 }
 0x269   : > { %v2555_v49 = vsel %vm2554_vm13, %v2844_v38, %v2551_v44 }
 0x26a   : > { %v2557_v1 = vmul.f32 %v2555_v49, %v2537_v47  ;;  %v2559_v13 = vmul.f32 %v2555_v49, %v2539_v60  ;;  %v2556_v0 = vmul.f32 %v2555_v49, %v2536_v46  ;;  %v2561_v12 = vmul.f32 %v2555_v49, %v2541_v22 }
 0x26b   : > { %v2563_v14 = vmul.f32 %v2555_v49, %v2543_v48  ;;  %v2558_v16 = vmul.f32 %v2555_v49, %v2538_v15  ;;  %v2564_v18 = vmul.f32 %v2555_v49, %v2544_v29  ;;  %v2560_v19 = vmul.f32 %v2555_v49, %v2540_v50 }
 0x26c   : > { %v2573_v4 = vrot.slane %v2557_v1, 4  ;;  %v2574_v43 = vrot.slane %v2559_v13, 4  ;;  %v2562_v23 = vmul.f32 %v2555_v49, %v2542_v3  ;;  %v2575_v30 = vrot.slane %v2561_v12, 4 }
 0x26d   : > { %v2576_v39 = vrot.slane %v2563_v14, 4  ;;  %2589 = vst.msk [vmem:[%s170_s25 + $0x20] sm:$0xf] %vm2499_vm10, %v2564_v18 }
 0x26e   : > { %v2577_v32 = vsel %vm232_vm1, %v2556_v0, %v2573_v4  ;;  %v2578_v51 = vsel %vm232_vm1, %v2558_v16, %v2574_v43  ;;  %v2579_v53 = vsel %vm232_vm1, %v2560_v19, %v2575_v30 }
 0x26f   : > { %v2580_v28 = vsel %vm232_vm1, %v2562_v23, %v2576_v39  ;;  %2585 = vst [vmem:[%s170_s25] sm:$0xff] %v2577_v32 }
 0x270   : > { %2586 = vst [vmem:[%s170_s25 + $0x8] sm:$0xff] %v2578_v51 }
 0x271   : > { %2587 = vst [vmem:[%s170_s25 + $0x10] sm:$0xff] %v2579_v53 }
 0x272   : > { %2588 = vst [vmem:[%s170_s25 + $0x18] sm:$0xff] %v2580_v28 }
 0x273 PF: > { %s13_s12 = sadd.s32 1, %s2851_s12  }
 0x274   : > { %p10_p4 = scmp.ge.s32.totalorder %s13_s12, 4  }
 0x276   :  { %12 = sbr.rel (!%p10_p4) target bundleno = 1 (0x1), region = 97 }

</bundles_post_ra>
